<compile_context>
chip_gen: v7x
topology: tpu7x:2x2x1
jax: 0.10.0
libtpu: 0.0.40
codegen_flags: <defaults>
</compile_context>

<pallas_src>
import functools

import jax
import jax.numpy as jnp
from jax import lax
from jax.experimental import pallas as pl
from jax.experimental.pallas import tpu as pltpu

_LANE = 128          # output-channel blocks are padded to full lane width
_STATS_ROWS = 8      # sublane-aligned rows per per-image BN-stats block


def _round_up(x, m):
    return (x + m - 1) // m * m


def _default_vmem_limit():
    """~3/4 of physical VMEM: ~96 MiB on v5e/v6e, 48 MiB on v7x / fallback."""
    cap = 64 * 1024 * 1024
    try:
        info = pltpu.get_tpu_info()
        cap = int(getattr(info, "vmem_capacity_bytes", cap))
    except Exception:
        pass
    return min(cap * 3 // 4, 100 * 1024 * 1024)


_VMEM_LIMIT = _default_vmem_limit()


def _compiler_params():
    return pltpu.CompilerParams(
        dimension_semantics=("parallel",),
        vmem_limit_bytes=_VMEM_LIMIT)


def _col_index_map(col):
    return lambda i: (i, col)


def _reduce_stats(stats, n_steps):
    """Tiny host-side reduction of per-step (sum, sumsq) partials -> (2, C)."""
    s = stats.reshape(n_steps, _STATS_ROWS, stats.shape[-1])
    return s[:, :2, :].sum(axis=0)        # rows 2..7 are never read (unwritten)


# --------------------------------------------------------------------------
# Kernel 1: 3x3 / stride-1 conv with in-kernel im2col.  One zero-padded NHWC
# image per grid step; 9 accumulating MXU dots over shifted (Ho, Wo) windows.
# Also emits per-image per-channel BN partial stats (sum, sum of squares).
# --------------------------------------------------------------------------
def _conv3x3_s1_stats_kernel(x_ref, w_ref, y_ref, s_ref):
    _, hp, wp, cin = x_ref.shape
    ho, wo = hp - 2, wp - 2
    cp = w_ref.shape[-1]
    acc = jnp.zeros((ho * wo, cp), jnp.float32)
    for t in range(9):                       # static unrolled: 9 tap dots
        dy, dx = divmod(t, 3)
        tap = x_ref[0, pl.ds(dy, ho), pl.ds(dx, wo), :].reshape(ho * wo, cin)
        acc = acc + jnp.dot(tap, w_ref[t], preferred_element_type=jnp.float32)
    y_ref[...] = acc.astype(y_ref.dtype)
    # Rows 2..7 of the stats block intentionally stay unwritten; the host
    # reduction only reads rows [:2].
    s_ref[0:1, :] = jnp.sum(acc, axis=0, keepdims=True)
    s_ref[1:2, :] = jnp.sum(acc * acc, axis=0, keepdims=True)


def conv3x3_s1_stats(x_pad, w_taps, *, out_dtype):
    """x_pad (N, Ho+2, Wo+2, Cin) conv w_taps (9, Cin, Cp) -> (N*Ho*Wo, Cp)."""
    n, hp, wp, cin = x_pad.shape
    ho, wo = hp - 2, wp - 2
    rows = ho * wo
    cp = w_taps.shape[-1]
    y, stats = pl.pallas_call(
        _conv3x3_s1_stats_kernel,
        out_shape=(jax.ShapeDtypeStruct((n * rows, cp), out_dtype),
                   jax.ShapeDtypeStruct((n * _STATS_ROWS, cp), jnp.float32)),
        grid=(n,),
        in_specs=[pl.BlockSpec((1, hp, wp, cin), lambda i: (i, 0, 0, 0)),
                  # constant block index -> the weight is DMA'd once and reused
                  pl.BlockSpec((9, cin, cp), lambda i: (0, 0, 0))],
        out_specs=(pl.BlockSpec((rows, cp), lambda i: (i, 0)),
                   pl.BlockSpec((_STATS_ROWS, cp), lambda i: (i, 0))),
        compiler_params=_compiler_params(),
    )(x_pad, w_taps)
    return y, _reduce_stats(stats, n)


# --------------------------------------------------------------------------
# Kernel 2: conv-as-matmul on host-built im2col patches (used only for the
# strided conv1 of downsample blocks; 1x1 shortcut fused as extra columns).
# --------------------------------------------------------------------------
def _matmul_stats_kernel(p_ref, w_ref, y_ref, s_ref):
    acc = jnp.dot(p_ref[...], w_ref[...], preferred_element_type=jnp.float32)
    y_ref[...] = acc.astype(y_ref.dtype)
    s_ref[0:1, :] = jnp.sum(acc, axis=0, keepdims=True)
    s_ref[1:2, :] = jnp.sum(acc * acc, axis=0, keepdims=True)


def conv_matmul_stats(patches, w, *, rows_per_step, out_dtype):
    r, k = patches.shape                       # k is the true (unpadded) K
    cp = w.shape[1]
    n = r // rows_per_step
    y, stats = pl.pallas_call(
        _matmul_stats_kernel,
        out_shape=(jax.ShapeDtypeStruct((r, cp), out_dtype),
                   jax.ShapeDtypeStruct((n * _STATS_ROWS, cp), jnp.float32)),
        grid=(n,),
        in_specs=[pl.BlockSpec((rows_per_step, k), lambda i: (i, 0)),
                  pl.BlockSpec((k, cp), lambda i: (0, 0))],
        out_specs=(pl.BlockSpec((rows_per_step, cp), lambda i: (i, 0)),
                   pl.BlockSpec((_STATS_ROWS, cp), lambda i: (i, 0))),
        compiler_params=_compiler_params(),
    )(patches, w)
    return y, _reduce_stats(stats, n)


# --------------------------------------------------------------------------
# Kernel 3: BN-folded FMA epilogue  y*scale + shift  (+ residual FMA) (+ReLU).
# Per-channel params arrive packed in one (8, C) block (rows 0..3).
# --------------------------------------------------------------------------
def _bn_act_kernel(*refs, relu, has_res):
    if has_res:
        y_ref, r_ref, p_ref, o_ref = refs
    else:
        y_ref, p_ref, o_ref = refs
    out = y_ref[...].astype(jnp.float32) * p_ref[0:1, :] + p_ref[1:2, :]
    if has_res:
        out = out + (r_ref[...].astype(jnp.float32) * p_ref[2:3, :]
                     + p_ref[3:4, :])
    if relu:
        out = jnp.maximum(out, 0.0)
    o_ref[...] = out.astype(o_ref.dtype)


def bn_act(y, p8, residual=None, *, relu, y_col=0, res_col=0,
           rows_per_step, width, out_dtype):
    r = y.shape[0]
    n = r // rows_per_step
    has_res = residual is not None

    def row_spec(col):
        return pl.BlockSpec((rows_per_step, width), _col_index_map(col))

    inputs, in_specs = [y], [row_spec(y_col)]
    if has_res:
        inputs.append(residual)
        in_specs.append(row_spec(res_col))
    inputs.append(p8)
    in_specs.append(pl.BlockSpec((8, width), lambda i: (0, 0)))

    kernel = functools.partial(_bn_act_kernel, relu=relu, has_res=has_res)
    return pl.pallas_call(
        kernel,
        out_shape=jax.ShapeDtypeStruct((r, width), out_dtype),
        grid=(n,),
        in_specs=in_specs,
        out_specs=pl.BlockSpec((rows_per_step, width), lambda i: (i, 0)),
        compiler_params=_compiler_params(),
    )(*inputs)


# --------------------------------------------------------------------------
# Host-side glue: BN folding, weight layout, im2col for the strided conv1.
# --------------------------------------------------------------------------
def _fold_bn(stat2, count, gamma, beta, eps):
    """Fold batch stats + affine params into one per-channel FMA."""
    mean = stat2[0] / count
    var = stat2[1] / count - mean * mean
    # TODO(synk): E[x^2]-E[x]^2 can cancel when mean^2 >> var; fine at these
    #             tolerances, use a centered pass for production BN.
    scale = gamma.astype(jnp.float32) * lax.rsqrt(var + eps)
    shift = beta.astype(jnp.float32) - mean * scale
    return scale, shift


def _pack_bn_params(scale, shift, res_scale=None, res_shift=None, *, width):
    p = jnp.zeros((8, width), jnp.float32)
    p = p.at[0, :scale.shape[0]].set(scale.astype(jnp.float32))
    p = p.at[1, :shift.shape[0]].set(shift.astype(jnp.float32))
    if res_scale is not None:
        p = p.at[2, :res_scale.shape[0]].set(res_scale.astype(jnp.float32))
        p = p.at[3, :res_shift.shape[0]].set(res_shift.astype(jnp.float32))
    return p


def _w3x3_taps(w_oihw):
    """(Cout, Cin, 3, 3) -> (9, Cin, Cout), taps ordered (dy, dx)."""
    co, ci, _, _ = w_oihw.shape
    return jnp.transpose(w_oihw, (2, 3, 1, 0)).reshape(9, ci, co)


def _im2col_3x3(x_nhwc, stride):
    """3x3, pad=1 im2col. Returns (N*Ho*Wo, 9*C) with (dy, dx, c) columns."""
    n, h, w, c = x_nhwc.shape
    xp = jnp.pad(x_nhwc, ((0, 0), (1, 1), (1, 1), (0, 0)))
    ho = (h + 2 - 3) // stride + 1
    wo = (w + 2 - 3) // stride + 1
    cols = []
    for dy in range(3):
        for dx in range(3):
            cols.append(xp[:, dy:dy + (ho - 1) * stride + 1:stride,
                              dx:dx + (wo - 1) * stride + 1:stride, :])
    patches = jnp.concatenate(cols, axis=-1)
    return patches.reshape(n * ho * wo, 9 * c)


# --------------------------------------------------------------------------
# BasicBlock.forward
# --------------------------------------------------------------------------
def basic_block_forward(x_nchw, params, stride, *, eps=1e-5,
                        compute_dtype=jnp.bfloat16):
    n, cin, h, w = x_nchw.shape
    c1 = params["w1"].shape[0]
    c1p = _round_up(c1, _LANE)
    has_ds = (stride != 1) or (cin != c1)

    ho = (h + 2 - 3) // stride + 1
    wo = (w + 2 - 3) // stride + 1
    rows = ho * wo                         # per-image row tile (no row padding)
    r = n * rows
    assert rows % 8 == 0, "per-image row tile must be sublane aligned"

    x = jnp.transpose(x_nchw, (0, 2, 3, 1)).astype(jnp.float32)      # NHWC f32

    # ---- conv1 --------------------------------------------------------------
    if has_ds:
        # Downsample block: host im2col (stride may be 2); the 1x1 shortcut
        # conv (== centre tap of the 3x3 patches) is fused in as extra output
        # columns at a 128-aligned offset so later kernels pick either half
        # purely via BlockSpec column indexing.
        k1 = 9 * cin                                   # true K (full-dim block)
        wc = jnp.zeros((k1, 2 * c1p), jnp.float32)
        wc = wc.at[:, :c1].set(_w3x3_taps(params["w1"]).reshape(k1, c1))
        ws = jnp.transpose(params["ws"][:, :, 0, 0], (1, 0))          # (Cin, C1)
        wc = wc.at[4 * cin:5 * cin, c1p:c1p + c1].set(ws)             # centre tap
        p1 = _im2col_3x3(x.astype(compute_dtype), stride)             # (R, 9*Cin)
        y1, s1 = conv_matmul_stats(p1, wc.astype(compute_dtype),
                                   rows_per_step=rows, out_dtype=compute_dtype)
    else:
        # Identity block: stride-1 conv with in-kernel im2col.  The input is
        # channel-padded once to a full lane width and reused as the residual.
        cinp = _round_up(cin, _LANE)
        x_cp = jnp.pad(x, ((0, 0), (0, 0), (0, 0), (0, cinp - cin)))   # f32
        x_sp = jnp.pad(x_cp, ((0, 0), (1, 1), (1, 1), (0, 0))).astype(compute_dtype)
        w1 = jnp.zeros((9, cinp, c1p), jnp.float32)
        w1 = w1.at[:, :cin, :c1].set(_w3x3_taps(params["w1"]))
        y1, s1 = conv3x3_s1_stats(x_sp, w1.astype(compute_dtype),
                                  out_dtype=compute_dtype)

    scale1, shift1 = _fold_bn(s1[:, :c1], r, params["g1"], params["b1"], eps)
    out1 = bn_act(y1, _pack_bn_params(scale1, shift1, width=c1p),
                  relu=True, y_col=0, rows_per_step=rows, width=c1p,
                  out_dtype=compute_dtype)

    # ---- residual branch ----------------------------------------------------
    if has_ds:
        res_arr, res_col = y1, 1                       # shortcut half of y1
        res_scale, res_shift = _fold_bn(s1[:, c1p:c1p + c1], r,
                                        params["gs"], params["bs"], eps)
    else:
        res_arr, res_col = x_cp.reshape(r, cinp), 0    # identity (f32)
        res_scale = jnp.ones((c1,), jnp.float32)
        res_shift = jnp.zeros((c1,), jnp.float32)

    # ---- conv2 (3x3, stride 1, in-kernel im2col) -> bn2 -> +shortcut -> relu
    out1_sp = jnp.pad(out1.reshape(n, ho, wo, c1p),
                      ((0, 0), (1, 1), (1, 1), (0, 0)))
    # TODO(synk): fold bn1+ReLU into conv2's patch load (needs a border mask).
    w2 = jnp.zeros((9, c1p, c1p), jnp.float32)
    w2 = w2.at[:, :c1, :c1].set(_w3x3_taps(params["w2"]))
    y2, s2 = conv3x3_s1_stats(out1_sp, w2.astype(compute_dtype),
                              out_dtype=compute_dtype)
    scale2, shift2 = _fold_bn(s2[:, :c1], r, params["g2"], params["b2"], eps)

    out = bn_act(y2,
                 _pack_bn_params(scale2, shift2, res_scale, res_shift,
                                 width=c1p),
                 residual=res_arr, relu=True, y_col=0, res_col=res_col,
                 rows_per_step=rows, width=c1p, out_dtype=jnp.float32)

    out = out[:, :c1].reshape(n, ho, wo, c1)
    return jnp.transpose(out, (0, 3, 1, 2))                           # NCHW


# --------------------------------------------------------------------------
# Pure-JAX reference (verification only)
# --------------------------------------------------------------------------
def reference_forward(x, params, stride, eps=1e-5):
    def conv(x, w, s, pad):
        return lax.conv_general_dilated(
            x, w, (s, s), ((pad, pad), (pad, pad)),
            dimension_numbers=("NCHW", "OIHW", "NCHW"))

    def bn(x, g, b):
        m = x.mean(axis=(0, 2, 3), keepdims=True)
        v = jnp.square(x - m).mean(axis=(0, 2, 3), keepdims=True)
        return ((x - m) * lax.rsqrt(v + eps) * g.reshape(1, -1, 1, 1)
                + b.reshape(1, -1, 1, 1))

    out = jax.nn.relu(bn(conv(x, params["w1"], stride, 1), params["g1"], params["b1"]))
    out = bn(conv(out, params["w2"], 1, 1), params["g2"], params["b2"])
    if stride != 1 or x.shape[1] != params["w1"].shape[0]:
        sc = bn(conv(x, params["ws"], stride, 0), params["gs"], params["bs"])
    else:
        sc = x
    return jax.nn.relu(out + sc)


# --------------------------------------------------------------------------
# Deterministic synthetic parameters (mirrors BasicBlock.__init__ shapes)
# --------------------------------------------------------------------------
def make_params(key, in_planes, planes, stride):
    ks = jax.random.split(key, 8)
    params = {
        "w1": 0.1 * jax.random.normal(ks[0], (planes, in_planes, 3, 3), jnp.float32),
        "g1": 1.0 + 0.1 * jax.random.normal(ks[1], (planes,), jnp.float32),
        "b1": 0.1 * jax.random.normal(ks[2], (planes,), jnp.float32),
        "w2": 0.1 * jax.random.normal(ks[3], (planes, planes, 3, 3), jnp.float32),
        "g2": 1.0 + 0.1 * jax.random.normal(ks[4], (planes,), jnp.float32),
        "b2": 0.1 * jax.random.normal(ks[5], (planes,), jnp.float32),
    }
    if stride != 1 or in_planes != planes:
        params["ws"] = 0.1 * jax.random.normal(ks[6], (planes, in_planes, 1, 1), jnp.float32)
        params["gs"] = jnp.ones((planes,), jnp.float32)
        params["bs"] = jnp.zeros((planes,), jnp.float32)
    return params


if __name__ == "__main__":
    key = jax.random.PRNGKey(0)
    k_x1, k_p1, k_x2, k_p2 = jax.random.split(key, 4)

    fwd = jax.jit(basic_block_forward,
                  static_argnames=("stride", "eps", "compute_dtype"))

    # Config A: downsampling block (stride=2, 4 -> 8 channels) — exercises the
    # host-im2col matmul path with the fused 1x1-conv + BN shortcut columns.
    x_a = jax.random.normal(k_x1, (2, 4, 16, 16), jnp.float32)
    params_a = make_params(k_p1, in_planes=4, planes=8, stride=2)
    ref_a = reference_forward(x_a, params_a, 2)

    out_a32 = jax.block_until_ready(
        fwd(x_a, params_a, stride=2, compute_dtype=jnp.float32))
    assert out_a32.shape == (2, 8, 8, 8)
    assert jnp.allclose(out_a32, ref_a, atol=2e-4, rtol=2e-4), "downsample f32 mismatch"

    out_a16 = jax.block_until_ready(
        fwd(x_a, params_a, stride=2, compute_dtype=jnp.bfloat16))
    assert jnp.allclose(out_a16, ref_a, atol=1.5e-1, rtol=1e-1), "downsample bf16 mismatch"

    # Config B: identity-shortcut block (stride=1, 8 -> 8 channels) — exercises
    # the in-kernel-im2col conv path for both convolutions.
    x_b = jax.random.normal(k_x2, (2, 8, 16, 16), jnp.float32)
    params_b = make_params(k_p2, in_planes=8, planes=8, stride=1)
    ref_b = reference_forward(x_b, params_b, 1)

    out_b32 = jax.block_until_ready(
        fwd(x_b, params_b, stride=1, compute_dtype=jnp.float32))
    assert out_b32.shape == (2, 8, 16, 16)
    assert jnp.allclose(out_b32, ref_b, atol=2e-4, rtol=2e-4), "identity f32 mismatch"

    out_b16 = jax.block_until_ready(
        fwd(x_b, params_b, stride=1, compute_dtype=jnp.bfloat16))
    assert jnp.allclose(out_b16, ref_b, atol=1.5e-1, rtol=1e-1), "identity bf16 mismatch"

    print("KERNEL_OK")
</pallas_src>

<mosaic_0001>
module attributes {stable_mosaic.version = 11 : i64} {
  func.func @_matmul_stats_kernel(%arg0: i32, %arg1: memref<64x36xf32, #tpu.memory_space<vmem>>, %arg2: memref<36x256xf32, #tpu.memory_space<vmem>>, %arg3: memref<64x256xf32, #tpu.memory_space<vmem>>, %arg4: memref<8x256xf32, #tpu.memory_space<vmem>>) attributes {dimension_semantics = [#tpu.dimension_semantics<parallel>], iteration_bounds = array<i64: 2>, scalar_prefetch = 0 : i64, scratch_operands = 0 : i64, tpu.core_type = #tpu.core_type<tc>, window_params = [{transform_indices = @transform_0, window_bounds = array<i64: 64, 36>}, {pipeline_mode = #tpu.pipeline_mode<synchronous>, transform_indices = @transform_1, window_bounds = array<i64: 36, 256>}, {transform_indices = @transform_2, window_bounds = array<i64: 64, 256>}, {transform_indices = @transform_3, window_bounds = array<i64: 8, 256>}]} {
    %c0 = arith.constant 0 : index
    %c0_0 = arith.constant 0 : index
    %0 = vector.load %arg1[%c0, %c0_0] : memref<64x36xf32, #tpu.memory_space<vmem>>, vector<64x36xf32>
    %c0_1 = arith.constant 0 : index
    %c0_2 = arith.constant 0 : index
    %1 = vector.load %arg2[%c0_1, %c0_2] : memref<36x256xf32, #tpu.memory_space<vmem>>, vector<36x256xf32>
    %cst = arith.constant dense<0.000000e+00> : vector<64x256xf32>
    %2 = tpu.matmul %0, %1, %cst {dimension_numbers = #tpu.dot_dimension_numbers<[1], [0], [0], [1], [0, 0, 1, 1], [], []>} : vector<64x36xf32>, vector<36x256xf32>, vector<64x256xf32> -> vector<64x256xf32>
    %c0_3 = arith.constant 0 : index
    %c0_4 = arith.constant 0 : index
    %3 = vector.load %arg3[%c0_3, %c0_4] : memref<64x256xf32, #tpu.memory_space<vmem>>, vector<64x256xf32>
    tpu.vector_store %arg3[%c0_3, %c0_4], %2 {strides = array<i32>} : memref<64x256xf32, #tpu.memory_space<vmem>>, vector<64x256xf32>,
    %cst_5 = arith.constant dense<0.000000e+00> : vector<256xf32>
    %4 = vector.multi_reduction <add>, %2, %cst_5 [0] : vector<64x256xf32> to vector<256xf32>
    %5 = vector.shape_cast %4 : vector<256xf32> to vector<1x256xf32>
    %c0_6 = arith.constant 0 : index
    %c0_7 = arith.constant 0 : index
    %6 = vector.load %arg4[%c0_6, %c0_7] : memref<8x256xf32, #tpu.memory_space<vmem>>, vector<1x256xf32>
    tpu.vector_store %arg4[%c0_6, %c0_7], %5 {strides = array<i32>} : memref<8x256xf32, #tpu.memory_space<vmem>>, vector<1x256xf32>,
    %7 = arith.mulf %2, %2 : vector<64x256xf32>
    %cst_8 = arith.constant dense<0.000000e+00> : vector<256xf32>
    %8 = vector.multi_reduction <add>, %7, %cst_8 [0] : vector<64x256xf32> to vector<256xf32>
    %9 = vector.shape_cast %8 : vector<256xf32> to vector<1x256xf32>
    %c1 = arith.constant 1 : index
    %c0_9 = arith.constant 0 : index
    %10 = vector.load %arg4[%c1, %c0_9] : memref<8x256xf32, #tpu.memory_space<vmem>>, vector<1x256xf32>
    tpu.vector_store %arg4[%c1, %c0_9], %9 {strides = array<i32>} : memref<8x256xf32, #tpu.memory_space<vmem>>, vector<1x256xf32>,
    return
  }
  func.func @transform_0(%arg0: i32) -> (i32, i32) {
    %c0_i32 = arith.constant 0 : i32
    %c0_i32_0 = arith.constant 0 : i32
    return %arg0, %c0_i32 : i32, i32
  }
  func.func @transform_1(%arg0: i32) -> (i32, i32) {
    %c0_i32 = arith.constant 0 : i32
    %c0_i32_0 = arith.constant 0 : i32
    %c0_i32_1 = arith.constant 0 : i32
    return %c0_i32, %c0_i32_0 : i32, i32
  }
  func.func @transform_2(%arg0: i32) -> (i32, i32) {
    %c0_i32 = arith.constant 0 : i32
    %c0_i32_0 = arith.constant 0 : i32
    return %arg0, %c0_i32 : i32, i32
  }
  func.func @transform_3(%arg0: i32) -> (i32, i32) {
    %c0_i32 = arith.constant 0 : i32
    %c0_i32_0 = arith.constant 0 : i32
    return %arg0, %c0_i32 : i32, i32
  }
}

module attributes {stable_mosaic.version = 11 : i64} {
  func.func @_bn_act_kernel(%arg0: i32, %arg1: memref<64x128xf32, #tpu.memory_space<vmem>>, %arg2: memref<8x128xf32, #tpu.memory_space<vmem>>, %arg3: memref<64x128xf32, #tpu.memory_space<vmem>>) attributes {dimension_semantics = [#tpu.dimension_semantics<parallel>], iteration_bounds = array<i64: 2>, scalar_prefetch = 0 : i64, scratch_operands = 0 : i64, tpu.core_type = #tpu.core_type<tc>, window_params = [{transform_indices = @transform_0, window_bounds = array<i64: 64, 128>}, {pipeline_mode = #tpu.pipeline_mode<synchronous>, transform_indices = @transform_1, window_bounds = array<i64: 8, 128>}, {transform_indices = @transform_2, window_bounds = array<i64: 64, 128>}]} {
    %c0 = arith.constant 0 : index
    %c0_0 = arith.constant 0 : index
    %0 = vector.load %arg1[%c0, %c0_0] : memref<64x128xf32, #tpu.memory_space<vmem>>, vector<64x128xf32>
    %c0_1 = arith.constant 0 : index
    %c0_2 = arith.constant 0 : index
    %1 = vector.load %arg2[%c0_1, %c0_2] : memref<8x128xf32, #tpu.memory_space<vmem>>, vector<1x128xf32>
    %2 = vector.broadcast %1 : vector<1x128xf32> to vector<64x128xf32>
    %3 = arith.mulf %0, %2 : vector<64x128xf32>
    %c1 = arith.constant 1 : index
    %c0_3 = arith.constant 0 : index
    %4 = vector.load %arg2[%c1, %c0_3] : memref<8x128xf32, #tpu.memory_space<vmem>>, vector<1x128xf32>
    %5 = vector.broadcast %4 : vector<1x128xf32> to vector<64x128xf32>
    %6 = arith.addf %3, %5 : vector<64x128xf32>
    %cst = arith.constant 0.000000e+00 : f32
    %7 = vector.broadcast %cst : f32 to vector<64x128xf32>
    %8 = arith.maximumf %6, %7 : vector<64x128xf32>
    %c0_4 = arith.constant 0 : index
    %c0_5 = arith.constant 0 : index
    %9 = vector.load %arg3[%c0_4, %c0_5] : memref<64x128xf32, #tpu.memory_space<vmem>>, vector<64x128xf32>
    tpu.vector_store %arg3[%c0_4, %c0_5], %8 {strides = array<i32>} : memref<64x128xf32, #tpu.memory_space<vmem>>, vector<64x128xf32>,
    return
  }
  func.func @transform_0(%arg0: i32) -> (i32, i32) {
    %c0_i32 = arith.constant 0 : i32
    %c0_i32_0 = arith.constant 0 : i32
    return %arg0, %c0_i32 : i32, i32
  }
  func.func @transform_1(%arg0: i32) -> (i32, i32) {
    %c0_i32 = arith.constant 0 : i32
    %c0_i32_0 = arith.constant 0 : i32
    %c0_i32_1 = arith.constant 0 : i32
    return %c0_i32, %c0_i32_0 : i32, i32
  }
  func.func @transform_2(%arg0: i32) -> (i32, i32) {
    %c0_i32 = arith.constant 0 : i32
    %c0_i32_0 = arith.constant 0 : i32
    return %arg0, %c0_i32 : i32, i32
  }
}

module attributes {stable_mosaic.version = 11 : i64} {
  func.func @_conv3x3_s1_stats_kernel(%arg0: i32, %arg1: memref<1x10x10x128xf32, #tpu.memory_space<vmem>>, %arg2: memref<9x128x128xf32, #tpu.memory_space<vmem>>, %arg3: memref<64x128xf32, #tpu.memory_space<vmem>>, %arg4: memref<8x128xf32, #tpu.memory_space<vmem>>) attributes {dimension_semantics = [#tpu.dimension_semantics<parallel>], iteration_bounds = array<i64: 2>, scalar_prefetch = 0 : i64, scratch_operands = 0 : i64, tpu.core_type = #tpu.core_type<tc>, window_params = [{transform_indices = @transform_0, window_bounds = array<i64: 1, 10, 10, 128>}, {pipeline_mode = #tpu.pipeline_mode<synchronous>, transform_indices = @transform_1, window_bounds = array<i64: 9, 128, 128>}, {transform_indices = @transform_2, window_bounds = array<i64: 64, 128>}, {transform_indices = @transform_3, window_bounds = array<i64: 8, 128>}]} {
    %cst = arith.constant 0.000000e+00 : f32
    %0 = vector.broadcast %cst : f32 to vector<64x128xf32>
    %c0 = arith.constant 0 : index
    %c0_0 = arith.constant 0 : index
    %c0_1 = arith.constant 0 : index
    %c0_2 = arith.constant 0 : index
    %1 = vector.load %arg1[%c0, %c0_0, %c0_1, %c0_2] : memref<1x10x10x128xf32, #tpu.memory_space<vmem>>, vector<1x8x8x128xf32>
    %2 = vector.shape_cast %1 : vector<1x8x8x128xf32> to vector<8x8x128xf32>
    %3 = vector.shape_cast %2 : vector<8x8x128xf32> to vector<64x128xf32>
    %c0_3 = arith.constant 0 : index
    %c0_4 = arith.constant 0 : index
    %c0_5 = arith.constant 0 : index
    %4 = vector.load %arg2[%c0_3, %c0_4, %c0_5] : memref<9x128x128xf32, #tpu.memory_space<vmem>>, vector<1x128x128xf32>
    %5 = vector.shape_cast %4 : vector<1x128x128xf32> to vector<128x128xf32>
    %cst_6 = arith.constant dense<0.000000e+00> : vector<64x128xf32>
    %6 = tpu.matmul %3, %5, %cst_6 {dimension_numbers = #tpu.dot_dimension_numbers<[1], [0], [0], [1], [0, 0, 1, 1], [], []>} : vector<64x128xf32>, vector<128x128xf32>, vector<64x128xf32> -> vector<64x128xf32>
    %7 = arith.addf %0, %6 : vector<64x128xf32>
    %c0_7 = arith.constant 0 : index
    %c0_8 = arith.constant 0 : index
    %c1 = arith.constant 1 : index
    %c0_9 = arith.constant 0 : index
    %8 = vector.load %arg1[%c0_7, %c0_8, %c1, %c0_9] : memref<1x10x10x128xf32, #tpu.memory_space<vmem>>, vector<1x8x8x128xf32>
    %9 = vector.shape_cast %8 : vector<1x8x8x128xf32> to vector<8x8x128xf32>
    %10 = vector.shape_cast %9 : vector<8x8x128xf32> to vector<64x128xf32>
    %c1_10 = arith.constant 1 : index
    %c0_11 = arith.constant 0 : index
    %c0_12 = arith.constant 0 : index
    %11 = vector.load %arg2[%c1_10, %c0_11, %c0_12] : memref<9x128x128xf32, #tpu.memory_space<vmem>>, vector<1x128x128xf32>
    %12 = vector.shape_cast %11 : vector<1x128x128xf32> to vector<128x128xf32>
    %cst_13 = arith.constant dense<0.000000e+00> : vector<64x128xf32>
    %13 = tpu.matmul %10, %12, %cst_13 {dimension_numbers = #tpu.dot_dimension_numbers<[1], [0], [0], [1], [0, 0, 1, 1], [], []>} : vector<64x128xf32>, vector<128x128xf32>, vector<64x128xf32> -> vector<64x128xf32>
    %14 = arith.addf %7, %13 : vector<64x128xf32>
    %c0_14 = arith.constant 0 : index
    %c0_15 = arith.constant 0 : index
    %c2 = arith.constant 2 : index
    %c0_16 = arith.constant 0 : index
    %15 = vector.load %arg1[%c0_14, %c0_15, %c2, %c0_16] : memref<1x10x10x128xf32, #tpu.memory_space<vmem>>, vector<1x8x8x128xf32>
    %16 = vector.shape_cast %15 : vector<1x8x8x128xf32> to vector<8x8x128xf32>
    %17 = vector.shape_cast %16 : vector<8x8x128xf32> to vector<64x128xf32>
    %c2_17 = arith.constant 2 : index
    %c0_18 = arith.constant 0 : index
    %c0_19 = arith.constant 0 : index
    %18 = vector.load %arg2[%c2_17, %c0_18, %c0_19] : memref<9x128x128xf32, #tpu.memory_space<vmem>>, vector<1x128x128xf32>
    %19 = vector.shape_cast %18 : vector<1x128x128xf32> to vector<128x128xf32>
    %cst_20 = arith.constant dense<0.000000e+00> : vector<64x128xf32>
    %20 = tpu.matmul %17, %19, %cst_20 {dimension_numbers = #tpu.dot_dimension_numbers<[1], [0], [0], [1], [0, 0, 1, 1], [], []>} : vector<64x128xf32>, vector<128x128xf32>, vector<64x128xf32> -> vector<64x128xf32>
    %21 = arith.addf %14, %20 : vector<64x128xf32>
    %c0_21 = arith.constant 0 : index
    %c1_22 = arith.constant 1 : index
    %c0_23 = arith.constant 0 : index
    %c0_24 = arith.constant 0 : index
    %22 = vector.load %arg1[%c0_21, %c1_22, %c0_23, %c0_24] : memref<1x10x10x128xf32, #tpu.memory_space<vmem>>, vector<1x8x8x128xf32>
    %23 = vector.shape_cast %22 : vector<1x8x8x128xf32> to vector<8x8x128xf32>
    %24 = vector.shape_cast %23 : vector<8x8x128xf32> to vector<64x128xf32>
    %c3 = arith.constant 3 : index
    %c0_25 = arith.constant 0 : index
    %c0_26 = arith.constant 0 : index
    %25 = vector.load %arg2[%c3, %c0_25, %c0_26] : memref<9x128x128xf32, #tpu.memory_space<vmem>>, vector<1x128x128xf32>
    %26 = vector.shape_cast %25 : vector<1x128x128xf32> to vector<128x128xf32>
    %cst_27 = arith.constant dense<0.000000e+00> : vector<64x128xf32>
    %27 = tpu.matmul %24, %26, %cst_27 {dimension_numbers = #tpu.dot_dimension_numbers<[1], [0], [0], [1], [0, 0, 1, 1], [], []>} : vector<64x128xf32>, vector<128x128xf32>, vector<64x128xf32> -> vector<64x128xf32>
    %28 = arith.addf %21, %27 : vector<64x128xf32>
    %c0_28 = arith.constant 0 : index
    %c1_29 = arith.constant 1 : index
    %c1_30 = arith.constant 1 : index
    %c0_31 = arith.constant 0 : index
    %29 = vector.load %arg1[%c0_28, %c1_29, %c1_30, %c0_31] : memref<1x10x10x128xf32, #tpu.memory_space<vmem>>, vector<1x8x8x128xf32>
    %30 = vector.shape_cast %29 : vector<1x8x8x128xf32> to vector<8x8x128xf32>
    %31 = vector.shape_cast %30 : vector<8x8x128xf32> to vector<64x128xf32>
    %c4 = arith.constant 4 : index
    %c0_32 = arith.constant 0 : index
    %c0_33 = arith.constant 0 : index
    %32 = vector.load %arg2[%c4, %c0_32, %c0_33] : memref<9x128x128xf32, #tpu.memory_space<vmem>>, vector<1x128x128xf32>
    %33 = vector.shape_cast %32 : vector<1x128x128xf32> to vector<128x128xf32>
    %cst_34 = arith.constant dense<0.000000e+00> : vector<64x128xf32>
    %34 = tpu.matmul %31, %33, %cst_34 {dimension_numbers = #tpu.dot_dimension_numbers<[1], [0], [0], [1], [0, 0, 1, 1], [], []>} : vector<64x128xf32>, vector<128x128xf32>, vector<64x128xf32> -> vector<64x128xf32>
    %35 = arith.addf %28, %34 : vector<64x128xf32>
    %c0_35 = arith.constant 0 : index
    %c1_36 = arith.constant 1 : index
    %c2_37 = arith.constant 2 : index
    %c0_38 = arith.constant 0 : index
    %36 = vector.load %arg1[%c0_35, %c1_36, %c2_37, %c0_38] : memref<1x10x10x128xf32, #tpu.memory_space<vmem>>, vector<1x8x8x128xf32>
    %37 = vector.shape_cast %36 : vector<1x8x8x128xf32> to vector<8x8x128xf32>
    %38 = vector.shape_cast %37 : vector<8x8x128xf32> to vector<64x128xf32>
    %c5 = arith.constant 5 : index
    %c0_39 = arith.constant 0 : index
    %c0_40 = arith.constant 0 : index
    %39 = vector.load %arg2[%c5, %c0_39, %c0_40] : memref<9x128x128xf32, #tpu.memory_space<vmem>>, vector<1x128x128xf32>
    %40 = vector.shape_cast %39 : vector<1x128x128xf32> to vector<128x128xf32>
    %cst_41 = arith.constant dense<0.000000e+00> : vector<64x128xf32>
    %41 = tpu.matmul %38, %40, %cst_41 {dimension_numbers = #tpu.dot_dimension_numbers<[1], [0], [0], [1], [0, 0, 1, 1], [], []>} : vector<64x128xf32>, vector<128x128xf32>, vector<64x128xf32> -> vector<64x128xf32>
    %42 = arith.addf %35, %41 : vector<64x128xf32>
    %c0_42 = arith.constant 0 : index
    %c2_43 = arith.constant 2 : index
    %c0_44 = arith.constant 0 : index
    %c0_45 = arith.constant 0 : index
    %43 = vector.load %arg1[%c0_42, %c2_43, %c0_44, %c0_45] : memref<1x10x10x128xf32, #tpu.memory_space<vmem>>, vector<1x8x8x128xf32>
    %44 = vector.shape_cast %43 : vector<1x8x8x128xf32> to vector<8x8x128xf32>
    %45 = vector.shape_cast %44 : vector<8x8x128xf32> to vector<64x128xf32>
    %c6 = arith.constant 6 : index
    %c0_46 = arith.constant 0 : index
    %c0_47 = arith.constant 0 : index
    %46 = vector.load %arg2[%c6, %c0_46, %c0_47] : memref<9x128x128xf32, #tpu.memory_space<vmem>>, vector<1x128x128xf32>
    %47 = vector.shape_cast %46 : vector<1x128x128xf32> to vector<128x128xf32>
    %cst_48 = arith.constant dense<0.000000e+00> : vector<64x128xf32>
    %48 = tpu.matmul %45, %47, %cst_48 {dimension_numbers = #tpu.dot_dimension_numbers<[1], [0], [0], [1], [0, 0, 1, 1], [], []>} : vector<64x128xf32>, vector<128x128xf32>, vector<64x128xf32> -> vector<64x128xf32>
    %49 = arith.addf %42, %48 : vector<64x128xf32>
    %c0_49 = arith.constant 0 : index
    %c2_50 = arith.constant 2 : index
    %c1_51 = arith.constant 1 : index
    %c0_52 = arith.constant 0 : index
    %50 = vector.load %arg1[%c0_49, %c2_50, %c1_51, %c0_52] : memref<1x10x10x128xf32, #tpu.memory_space<vmem>>, vector<1x8x8x128xf32>
    %51 = vector.shape_cast %50 : vector<1x8x8x128xf32> to vector<8x8x128xf32>
    %52 = vector.shape_cast %51 : vector<8x8x128xf32> to vector<64x128xf32>
    %c7 = arith.constant 7 : index
    %c0_53 = arith.constant 0 : index
    %c0_54 = arith.constant 0 : index
    %53 = vector.load %arg2[%c7, %c0_53, %c0_54] : memref<9x128x128xf32, #tpu.memory_space<vmem>>, vector<1x128x128xf32>
    %54 = vector.shape_cast %53 : vector<1x128x128xf32> to vector<128x128xf32>
    %cst_55 = arith.constant dense<0.000000e+00> : vector<64x128xf32>
    %55 = tpu.matmul %52, %54, %cst_55 {dimension_numbers = #tpu.dot_dimension_numbers<[1], [0], [0], [1], [0, 0, 1, 1], [], []>} : vector<64x128xf32>, vector<128x128xf32>, vector<64x128xf32> -> vector<64x128xf32>
    %56 = arith.addf %49, %55 : vector<64x128xf32>
    %c0_56 = arith.constant 0 : index
    %c2_57 = arith.constant 2 : index
    %c2_58 = arith.constant 2 : index
    %c0_59 = arith.constant 0 : index
    %57 = vector.load %arg1[%c0_56, %c2_57, %c2_58, %c0_59] : memref<1x10x10x128xf32, #tpu.memory_space<vmem>>, vector<1x8x8x128xf32>
    %58 = vector.shape_cast %57 : vector<1x8x8x128xf32> to vector<8x8x128xf32>
    %59 = vector.shape_cast %58 : vector<8x8x128xf32> to vector<64x128xf32>
    %c8 = arith.constant 8 : index
    %c0_60 = arith.constant 0 : index
    %c0_61 = arith.constant 0 : index
    %60 = vector.load %arg2[%c8, %c0_60, %c0_61] : memref<9x128x128xf32, #tpu.memory_space<vmem>>, vector<1x128x128xf32>
    %61 = vector.shape_cast %60 : vector<1x128x128xf32> to vector<128x128xf32>
    %cst_62 = arith.constant dense<0.000000e+00> : vector<64x128xf32>
    %62 = tpu.matmul %59, %61, %cst_62 {dimension_numbers = #tpu.dot_dimension_numbers<[1], [0], [0], [1], [0, 0, 1, 1], [], []>} : vector<64x128xf32>, vector<128x128xf32>, vector<64x128xf32> -> vector<64x128xf32>
    %63 = arith.addf %56, %62 : vector<64x128xf32>
    %c0_63 = arith.constant 0 : index
    %c0_64 = arith.constant 0 : index
    %64 = vector.load %arg3[%c0_63, %c0_64] : memref<64x128xf32, #tpu.memory_space<vmem>>, vector<64x128xf32>
    tpu.vector_store %arg3[%c0_63, %c0_64], %63 {strides = array<i32>} : memref<64x128xf32, #tpu.memory_space<vmem>>, vector<64x128xf32>,
    %cst_65 = arith.constant dense<0.000000e+00> : vector<128xf32>
    %65 = vector.multi_reduction <add>, %63, %cst_65 [0] : vector<64x128xf32> to vector<128xf32>
    %66 = vector.shape_cast %65 : vector<128xf32> to vector<1x128xf32>
    %c0_66 = arith.constant 0 : index
    %c0_67 = arith.constant 0 : index
    %67 = vector.load %arg4[%c0_66, %c0_67] : memref<8x128xf32, #tpu.memory_space<vmem>>, vector<1x128xf32>
    tpu.vector_store %arg4[%c0_66, %c0_67], %66 {strides = array<i32>} : memref<8x128xf32, #tpu.memory_space<vmem>>, vector<1x128xf32>,
    %68 = arith.mulf %63, %63 : vector<64x128xf32>
    %cst_68 = arith.constant dense<0.000000e+00> : vector<128xf32>
    %69 = vector.multi_reduction <add>, %68, %cst_68 [0] : vector<64x128xf32> to vector<128xf32>
    %70 = vector.shape_cast %69 : vector<128xf32> to vector<1x128xf32>
    %c1_69 = arith.constant 1 : index
    %c0_70 = arith.constant 0 : index
    %71 = vector.load %arg4[%c1_69, %c0_70] : memref<8x128xf32, #tpu.memory_space<vmem>>, vector<1x128xf32>
    tpu.vector_store %arg4[%c1_69, %c0_70], %70 {strides = array<i32>} : memref<8x128xf32, #tpu.memory_space<vmem>>, vector<1x128xf32>,
    return
  }
  func.func @transform_0(%arg0: i32) -> (i32, i32, i32, i32) {
    %c0_i32 = arith.constant 0 : i32
    %c0_i32_0 = arith.constant 0 : i32
    %c0_i32_1 = arith.constant 0 : i32
    %c0_i32_2 = arith.constant 0 : i32
    return %arg0, %c0_i32, %c0_i32_0, %c0_i32_1 : i32, i32, i32, i32
  }
  func.func @transform_1(%arg0: i32) -> (i32, i32, i32) {
    %c0_i32 = arith.constant 0 : i32
    %c0_i32_0 = arith.constant 0 : i32
    %c0_i32_1 = arith.constant 0 : i32
    %c0_i32_2 = arith.constant 0 : i32
    return %c0_i32, %c0_i32_0, %c0_i32_1 : i32, i32, i32
  }
  func.func @transform_2(%arg0: i32) -> (i32, i32) {
    %c0_i32 = arith.constant 0 : i32
    %c0_i32_0 = arith.constant 0 : i32
    return %arg0, %c0_i32 : i32, i32
  }
  func.func @transform_3(%arg0: i32) -> (i32, i32) {
    %c0_i32 = arith.constant 0 : i32
    %c0_i32_0 = arith.constant 0 : i32
    return %arg0, %c0_i32 : i32, i32
  }
}

module attributes {stable_mosaic.version = 11 : i64} {
  func.func @_bn_act_kernel(%arg0: i32, %arg1: memref<64x128xf32, #tpu.memory_space<vmem>>, %arg2: memref<64x128xf32, #tpu.memory_space<vmem>>, %arg3: memref<8x128xf32, #tpu.memory_space<vmem>>, %arg4: memref<64x128xf32, #tpu.memory_space<vmem>>) attributes {dimension_semantics = [#tpu.dimension_semantics<parallel>], iteration_bounds = array<i64: 2>, scalar_prefetch = 0 : i64, scratch_operands = 0 : i64, tpu.core_type = #tpu.core_type<tc>, window_params = [{transform_indices = @transform_0, window_bounds = array<i64: 64, 128>}, {transform_indices = @transform_1, window_bounds = array<i64: 64, 128>}, {pipeline_mode = #tpu.pipeline_mode<synchronous>, transform_indices = @transform_2, window_bounds = array<i64: 8, 128>}, {transform_indices = @transform_3, window_bounds = array<i64: 64, 128>}]} {
    %c0 = arith.constant 0 : index
    %c0_0 = arith.constant 0 : index
    %0 = vector.load %arg1[%c0, %c0_0] : memref<64x128xf32, #tpu.memory_space<vmem>>, vector<64x128xf32>
    %c0_1 = arith.constant 0 : index
    %c0_2 = arith.constant 0 : index
    %1 = vector.load %arg3[%c0_1, %c0_2] : memref<8x128xf32, #tpu.memory_space<vmem>>, vector<1x128xf32>
    %2 = vector.broadcast %1 : vector<1x128xf32> to vector<64x128xf32>
    %3 = arith.mulf %0, %2 : vector<64x128xf32>
    %c1 = arith.constant 1 : index
    %c0_3 = arith.constant 0 : index
    %4 = vector.load %arg3[%c1, %c0_3] : memref<8x128xf32, #tpu.memory_space<vmem>>, vector<1x128xf32>
    %5 = vector.broadcast %4 : vector<1x128xf32> to vector<64x128xf32>
    %6 = arith.addf %3, %5 : vector<64x128xf32>
    %c0_4 = arith.constant 0 : index
    %c0_5 = arith.constant 0 : index
    %7 = vector.load %arg2[%c0_4, %c0_5] : memref<64x128xf32, #tpu.memory_space<vmem>>, vector<64x128xf32>
    %c2 = arith.constant 2 : index
    %c0_6 = arith.constant 0 : index
    %8 = vector.load %arg3[%c2, %c0_6] : memref<8x128xf32, #tpu.memory_space<vmem>>, vector<1x128xf32>
    %9 = vector.broadcast %8 : vector<1x128xf32> to vector<64x128xf32>
    %10 = arith.mulf %7, %9 : vector<64x128xf32>
    %c3 = arith.constant 3 : index
    %c0_7 = arith.constant 0 : index
    %11 = vector.load %arg3[%c3, %c0_7] : memref<8x128xf32, #tpu.memory_space<vmem>>, vector<1x128xf32>
    %12 = vector.broadcast %11 : vector<1x128xf32> to vector<64x128xf32>
    %13 = arith.addf %10, %12 : vector<64x128xf32>
    %14 = arith.addf %6, %13 : vector<64x128xf32>
    %cst = arith.constant 0.000000e+00 : f32
    %15 = vector.broadcast %cst : f32 to vector<64x128xf32>
    %16 = arith.maximumf %14, %15 : vector<64x128xf32>
    %c0_8 = arith.constant 0 : index
    %c0_9 = arith.constant 0 : index
    %17 = vector.load %arg4[%c0_8, %c0_9] : memref<64x128xf32, #tpu.memory_space<vmem>>, vector<64x128xf32>
    tpu.vector_store %arg4[%c0_8, %c0_9], %16 {strides = array<i32>} : memref<64x128xf32, #tpu.memory_space<vmem>>, vector<64x128xf32>,
    return
  }
  func.func @transform_0(%arg0: i32) -> (i32, i32) {
    %c0_i32 = arith.constant 0 : i32
    %c0_i32_0 = arith.constant 0 : i32
    return %arg0, %c0_i32 : i32, i32
  }
  func.func @transform_1(%arg0: i32) -> (i32, i32) {
    %c1_i32 = arith.constant 1 : i32
    %c0_i32 = arith.constant 0 : i32
    return %arg0, %c1_i32 : i32, i32
  }
  func.func @transform_2(%arg0: i32) -> (i32, i32) {
    %c0_i32 = arith.constant 0 : i32
    %c0_i32_0 = arith.constant 0 : i32
    %c0_i32_1 = arith.constant 0 : i32
    return %c0_i32, %c0_i32_0 : i32, i32
  }
  func.func @transform_3(%arg0: i32) -> (i32, i32) {
    %c0_i32 = arith.constant 0 : i32
    %c0_i32_0 = arith.constant 0 : i32
    return %arg0, %c0_i32 : i32, i32
  }
}

</mosaic_0001>

<bundles_post_ra>
// kernel: basic_block_forward.5
= control target key start
LH: loop header
LB: loop body
LE: loop exit
PB: predicated region body
PF: predicated region fallthrough
CT: control target
= control target key end

     0   :  { %s403_s9 = smov 0   ;;  %s405_s10 = smov 0   ;;  %s461_s0 = inlined_call_operand.vmem [shape: f32[128,256], index: 0, kind: input, shape index: {}]   ;;  %s462_s1 = inlined_call_operand.vmem [shape: f32[8,128], index: 1, kind: input, shape index: {}]   ;;  %s463_s2 = inlined_call_operand.vmem [shape: f32[128,128], index: 2, kind: output, shape index: {}]  }
   0x1   :  { %s407_s11 = smov 0  }
   0x2 LB: > { %s322_s12 = sadd.s32 4294967295, %s386_s11   ;;  %s420_s13 = sadd.s32 1, %s386_s11   ;;  %s386_s11 = sphi %s407_s11, %s466_s11   ;;  %s382_s10 = sphi %s405_s10, %s465_s10   ;;  %s378_s9 = sphi %s403_s9, %s464_s9  }
   0x3   : > { %s16_s14 = ssub.s32 %s386_s11, %s420_s13  ;;  %s19_s15 = sadd.s32 1, %s382_s10 }
   0x4   : > { %p17_p0 = scmp.eq.s32.totalorder %s16_s14, 0  ;;  %p26_p1 = scmp.ne.s32.totalorder %s382_s10, %s378_s9 }
   0x5   : > { %p27_p2 = scmp.eq.s32.totalorder %s386_s11, 0  ;;  %p325_p4 = scmp.ge.s32.totalorder %s386_s11, 2 }
   0x6   : > { %s429_s16 = scalar_select %p17_p0, %s382_s10, %s19_s15  }
   0x7   : > { %p28_p3 = por %p27_p2, %p26_p1  ;;  %102 = sbr.rel (%p325_p4) target bundleno = 22 (0x16), region = 20 }
   0xe   : > { %105 = sbr.rel (!%p28_p3) target bundleno = 22 (0x16), region = 24  ;;  %s107_s17 = sand.u32 (%p28_p3), 1, %s382_s10  }
   0xf   : > { %s339_s18 = sshll.u32 (%p28_p3), %s386_s11, 7  ;;  %s326_s19 = sshll.u32 (%p28_p3), %s107_s17, 6 }
  0x10   : > { %s113_s22 = scalar_lea.vmem (%p28_p3), %s461_s0, %s339_s18  ;;  %s109_s23 = scalar_lea.vmem (%p28_p3), [#allocation2], %s326_s19 }
  0x11   : > { %v155_v0 = vld [vmem:[%s113_s22] sm:$0xff] (%p28_p3)  ;;  %v157_v1 = vld [vmem:[%s113_s22 + $0x10] sm:$0xff] (%p28_p3) }
  0x12   : > { %v159_v2 = vld [vmem:[%s113_s22 + $0x20] sm:$0xff] (%p28_p3)  ;;  %156 = vst [vmem:[%s109_s23] sm:$0xff] (%p28_p3), %v155_v0  ;;  %158 = vst [vmem:[%s109_s23 + $0x8] sm:$0xff] (%p28_p3), %v157_v1  ;;  %v161_v3 = vld [vmem:[%s113_s22 + $0x30] sm:$0xff] (%p28_p3) }
  0x13   : > { %160 = vst [vmem:[%s109_s23 + $0x10] sm:$0xff] (%p28_p3), %v159_v2  ;;  %v163_v4 = vld [vmem:[%s113_s22 + $0x40] sm:$0xff] (%p28_p3)  ;;  %v165_v5 = vld [vmem:[%s113_s22 + $0x50] sm:$0xff] (%p28_p3)  ;;  %162 = vst [vmem:[%s109_s23 + $0x18] sm:$0xff] (%p28_p3), %v161_v3 }
  0x14   : > { %164 = vst [vmem:[%s109_s23 + $0x20] sm:$0xff] (%p28_p3), %v163_v4  ;;  %166 = vst [vmem:[%s109_s23 + $0x28] sm:$0xff] (%p28_p3), %v165_v5  ;;  %v167_v6 = vld [vmem:[%s113_s22 + $0x60] sm:$0xff] (%p28_p3)  ;;  %v169_v7 = vld [vmem:[%s113_s22 + $0x70] sm:$0xff] (%p28_p3) }
  0x15   : > { %168 = vst [vmem:[%s109_s23 + $0x30] sm:$0xff] %v167_v6  ;;  %170 = vst [vmem:[%s109_s23 + $0x38] sm:$0xff] %v169_v7 }
  0x16 PF: > { %p330_p5 = scmp.ge.s32.totalorder %s386_s11, 1  ;;  %p175_p6 = scmp.lt.s32.totalorder %s386_s11, 3 }
  0x18   : > { %p176_p7 = pnand %p330_p5, %p175_p6 }
  0x19   : > { %s182_s24 = sand.u32 (!%p176_p7), 1, %s378_s9   ;;  %s332_s25 = sshll.u32 (!%p176_p7), %s322_s12, 3  ;;  %v334_v8 = vld [vmem:[%s462_s1] ss:$0 sm:$0xff] (!%p176_p7)  ;;  %v335_v9 = vld [vmem:[%s462_s1 + $0x1] ss:$0 sm:$0xff] (!%p176_p7) }
  0x1a   : > { %179 = sbr.rel (%p176_p7) target bundleno = 40 (0x28), region = 62  ;;  %s331_s26 = sshll.u32 (!%p176_p7), %s182_s24, 6 }
  0x1b   : > { %p205_p8 = scmp.lt.s32.totalorder (!%p176_p7), %s332_s25, 15  ;;  %s184_s3 = scalar_lea.vmem (!%p176_p7), [#allocation2], %s331_s26 }
  0x1c   : > { %v210_v10 = vld [vmem:[%s184_s3] sm:$0xff] (!%p176_p7)  ;;  %v211_v11 = vld [vmem:[%s184_s3 + $0x8] sm:$0xff] (!%p176_p7)  ;;  %v212_v12 = vld [vmem:[%s184_s3 + $0x10] sm:$0xff] (!%p176_p7) }
  0x1d   : > { %v223_v13 = vmul.f32 (!%p176_p7), %v334_v8, %v210_v10  ;;  %v224_v14 = vmul.f32 (!%p176_p7), %v334_v8, %v211_v11  ;;  %v225_v15 = vmul.f32 (!%p176_p7), %v334_v8, %v212_v12  ;;  %v213_v16 = vld [vmem:[%s184_s3 + $0x18] sm:$0xff] (!%p176_p7)  ;;  %v214_v17 = vld [vmem:[%s184_s3 + $0x20] sm:$0xff] (!%p176_p7)  ;;  %v215_v18 = vld [vmem:[%s184_s3 + $0x28] sm:$0xff] (!%p176_p7) }
  0x1e   : > { %v226_v19 = vmul.f32 (!%p176_p7), %v334_v8, %v213_v16  ;;  %v227_v20 = vmul.f32 (!%p176_p7), %v334_v8, %v214_v17  ;;  %v228_v21 = vmul.f32 (!%p176_p7), %v334_v8, %v215_v18  ;;  %v216_v22 = vld [vmem:[%s184_s3 + $0x30] sm:$0xff] (!%p176_p7)  ;;  %v217_v23 = vld [vmem:[%s184_s3 + $0x38] sm:$0xff] (!%p176_p7) }
  0x1f   : > { %v236_v24 = vadd.f32 (!%p176_p7), %v335_v9, %v223_v13  ;;  %v237_v25 = vadd.f32 (!%p176_p7), %v335_v9, %v224_v14  ;;  %v238_v26 = vadd.f32 (!%p176_p7), %v335_v9, %v225_v15  ;;  %v229_v27 = vmul.f32 (!%p176_p7), %v334_v8, %v216_v22 }
  0x20   : > { %v239_v28 = vadd.f32 (!%p176_p7), %v335_v9, %v226_v19  ;;  %v240_v29 = vadd.f32 (!%p176_p7), %v335_v9, %v227_v20  ;;  %v241_v30 = vadd.f32 (!%p176_p7), %v335_v9, %v228_v21  ;;  %v230_v31 = vmul.f32 (!%p176_p7), %v334_v8, %v217_v23 }
  0x21   : > { %s468_s25 = smov (!%p205_p8, %s332_s25), 15  ;;  %v244_v32 = vmax.f32 %v236_v24, 0.0  ;;  %v245_v33 = vmax.f32 %v237_v25, 0.0  ;;  %v246_v34 = vmax.f32 %v238_v26, 0.0  ;;  %v242_v35 = vadd.f32 %v335_v9, %v229_v27 }
  0x22   : > { %s333_s4 = sshll.u32 %s468_s25, 3  ;;  %v247_v36 = vmax.f32 %v239_v28, 0.0  ;;  %v248_v37 = vmax.f32 %v240_v29, 0.0  ;;  %v249_v38 = vmax.f32 %v241_v30, 0.0  ;;  %v243_v39 = vadd.f32 %v335_v9, %v230_v31 }
  0x23   : > { %s208_s7 = scalar_lea.vmem %s463_s2, %s333_s4  ;;  %v250_v40 = vmax.f32 %v242_v35, 0.0 }
  0x24   : > { %252 = vst [vmem:[%s208_s7] sm:$0xff] %v244_v32  ;;  %253 = vst [vmem:[%s208_s7 + $0x8] sm:$0xff] %v245_v33  ;;  %v251_v41 = vmax.f32 %v243_v39, 0.0 }
  0x25   : > { %254 = vst [vmem:[%s208_s7 + $0x10] sm:$0xff] %v246_v34  ;;  %255 = vst [vmem:[%s208_s7 + $0x18] sm:$0xff] %v247_v36 }
  0x26   : > { %256 = vst [vmem:[%s208_s7 + $0x20] sm:$0xff] %v248_v37  ;;  %257 = vst [vmem:[%s208_s7 + $0x28] sm:$0xff] %v249_v38 }
  0x27   : > { %258 = vst [vmem:[%s208_s7 + $0x30] sm:$0xff] %v250_v40  ;;  %259 = vst [vmem:[%s208_s7 + $0x38] sm:$0xff] %v251_v41 }
  0x28 PF: > { %p9_p9 = scmp.ge.s32.totalorder %s420_s13, 4   ;;  %s464_s9 = smov %s382_s10 }
  0x29   : > { %s465_s10 = smov %s429_s16  ;;  %s466_s11 = smov %s420_s13 }
  0x2a   :  { %11 = sbr.rel (!%p9_p9) target bundleno = 2 (0x2), region = 101 }

// kernel: basic_block_forward.4
= control target key start
LH: loop header
LB: loop body
LE: loop exit
PB: predicated region body
PF: predicated region fallthrough
CT: control target
= control target key end

     0   :  { %s653_s12 = smov 0   ;;  %s738_s0 = inlined_call_operand.vmem [shape: f32[128,36], index: 0, kind: input, shape index: {}]   ;;  %s739_s1 = inlined_call_operand.vmem [shape: f32[36,256], index: 1, kind: input, shape index: {}]   ;;  %s740_s2 = inlined_call_operand.vmem [shape: f32[128,256], index: 2, kind: output, shape index: {0}]   ;;  %s741_s3 = inlined_call_operand.vmem [shape: f32[16,256], index: 3, kind: output, shape index: {1}]  }
   0x1 LB: > { %s659_s13 = sadd.s32 4294967295, %s629_s12   ;;  %p576_p0 = scmp.ge.s32.totalorder %s629_s12, 1  ;;  %s629_s12 = sphi %s653_s12, %s14_s12  }
   0x2   : > { %p141_p1 = scmp.lt.s32.totalorder %s629_s12, 3 }
   0x4   : > { %p142_p2 = pnand %p576_p0, %p141_p1 }
   0x5   : > { %v198_v0 = vld [vmem:[%s739_s1 + $0x8] sm:$0xff] (!%p142_p2)  ;;  %v200_v1 = vld [vmem:[%s739_s1 + $0x18] sm:$0xff] (!%p142_p2)  ;;  %v197_v2 = vld [vmem:[%s739_s1] sm:$0xff] (!%p142_p2)  ;;  %s577_s20 = sshll.u32 (!%p142_p2), %s659_s13, 3  ;;  %v631_v7 = vmov (!%p142_p2), 0.0   ;;  %vm232_vm0 = vcmask (!%p142_p2), 1043456  }
   0x6   : > { %145 = sbr.rel (%p142_p2) target bundleno = 274 (0x112), region = 28  ;;  %v599_v3 = vpack.c.bf16 (!%p142_p2), %v200_v1, %v198_v0  ;;  %v199_v4 = vld [vmem:[%s739_s1 + $0x10] sm:$0xff] (!%p142_p2)  ;;  %v202_v5 = vld [vmem:[%s739_s1 + $0x28] sm:$0xff] (!%p142_p2)  ;;  %v204_v6 = vld [vmem:[%s739_s1 + $0x38] sm:$0xff] (!%p142_p2)  ;;  %303 = vmatprep.mubr.f32.mxu0 (!%p142_p2), %v631_v7  ;;  %p172_p3 = scmp.lt.s32.totalorder (!%p142_p2), %s577_s20, 15  ;;  %327 = vmatprep.mubr.f32.mxu1 (!%p142_p2), %v631_v7  ;;  %vm207_vm1 = vcmask (!%p142_p2), 293888  }
   0x7   : > { %v601_v8 = vpack.c.bf16 (!%p142_p2), %v199_v4, %v197_v2  ;;  %v603_v9 = vpack.c.bf16 (!%p142_p2), %v204_v6, %v202_v5  ;;  %v201_v10 = vld [vmem:[%s739_s1 + $0x20] sm:$0xff] (!%p142_p2)  ;;  %v203_v11 = vld [vmem:[%s739_s1 + $0x30] sm:$0xff] (!%p142_p2)  ;;  %v206_v13 = vld [vmem:[%s739_s1 + $0x48] sm:$0xf] (!%p142_p2)  ;;  %p184_p4 = scmp.lt.s32.totalorder (!%p142_p2), %s659_s13, 1 }
   0x8   : > { %600 = vmatprep.subr.bf16.mxu0 (!%p142_p2), %v599_v3  ;;  %607 = vmatprep.subr.bf16.mxu1 (!%p142_p2), %v599_v3  ;;  %v605_v12 = vpack.c.bf16 (!%p142_p2), %v203_v11, %v201_v10  ;;  %v205_v14 = vld [vmem:[%s739_s1 + $0x40] sm:$0xf] (!%p142_p2) }
   0x9   : > { %602 = vmatpush1.bf16.msra.mxu0 (!%p142_p2), %v601_v8  ;;  %610 = vmatpush1.bf16.msra.mxu1 (!%p142_p2), %v601_v8 }
   0xa   : > { %604 = vmatprep.subr.bf16.mxu0 (!%p142_p2), %v603_v9  ;;  %608 = vmatprep.subr.bf16.mxu1 (!%p142_p2), %v603_v9 }
   0xd   : > { %s743_s20 = smov (!%p172_p3, %s577_s20), 15  ;;  %606 = vmatpush1.bf16.msra.mxu0 %v605_v12  ;;  %611 = vmatpush1.bf16.msra.mxu1 %v605_v12  ;;  %s745_s13 = smov (!%p184_p4, %s659_s13), 1 }
   0xe   : > { %s578_s4 = sshll.u32 %s743_s20, 3  ;;  %584 = vmatprep.subr.msk.mxu0 %vm232_vm0, %v206_v13  ;;  %609 = vmatprep.subr.msk.mxu1 %vm232_vm0, %v206_v13  ;;  %s597_s14 = sshll.u32 %s743_s20, 4 }
   0xf   : > { %s175_s9 = scalar_lea.vmem %s738_s0, %s578_s4  ;;  %s712_s17 = scalar_lea.vmem %s740_s2, %s597_s14 }
  0x10   : > { %v189_v15 = vld [vmem:[%s175_s9] sm:$0xff]  ;;  %v190_v17 = vld [vmem:[%s175_s9 + $0x8] sm:$0xff]  ;;  %v191_v19 = vld [vmem:[%s175_s9 + $0x10] sm:$0xff]  ;;  %s598_s18 = sshll.u32 %s745_s13, 4 }
  0x11   : > { %v193_v16 = vld [vmem:[%s175_s9 + $0x20] sm:$0xff]  ;;  %585 = vmatpush1.msk.msra.mxu0 %vm232_vm0, %v205_v14  ;;  %612 = vmatpush1.msk.msra.mxu1 %vm232_vm0, %v205_v14  ;;  %v194_v18 = vld [vmem:[%s175_s9 + $0x28] sm:$0xff]  ;;  %v195_v20 = vld [vmem:[%s175_s9 + $0x30] sm:$0xff]  ;;  %s188_s21 = scalar_lea.vmem %s741_s3, %s598_s18 }
  0x12   : > { %586 = vmatmul.mubr.msk.f32.vlgmr.msra.gmra.mrb[0].mxu0 %vm207_vm1, %v189_v15  ;;  %590 = vmatmul.mubr.msk.f32.vlgmr.msra.gmra.mrb[0].mxu1 %vm207_vm1, %v193_v16  ;;  %v192_v21 = vld [vmem:[%s175_s9 + $0x18] sm:$0xff] }
  0x13   : > { %309 = vmatprep.mubr.f32.mxu0 %v631_v7  ;;  %333 = vmatprep.mubr.f32.mxu1 %v631_v7  ;;  %v196_v22 = vld [vmem:[%s175_s9 + $0x38] sm:$0xff] }
  0x16   : > { %587 = vmatmul.mubr.msk.f32.gmra.mrb[2].mxu0 %vm207_vm1, %v190_v17  ;;  %591 = vmatmul.mubr.msk.f32.gmra.mrb[2].mxu1 %vm207_vm1, %v194_v18 }
  0x17   : > { %315 = vmatprep.mubr.f32.mxu0 %v631_v7  ;;  %339 = vmatprep.mubr.f32.mxu1 %v631_v7 }
  0x1a   : > { %588 = vmatmul.mubr.msk.f32.gmra.mrb[4].mxu0 %vm207_vm1, %v191_v19  ;;  %592 = vmatmul.mubr.msk.f32.gmra.mrb[4].mxu1 %vm207_vm1, %v195_v20 }
  0x1b   : > { %321 = vmatprep.mubr.f32.mxu0 %v631_v7  ;;  %345 = vmatprep.mubr.f32.mxu1 %v631_v7 }
  0x1e   : > { %589 = vmatmul.mubr.msk.f32.gmra.mrb[6].mxu0 %vm207_vm1, %v192_v21  ;;  %593 = vmatmul.mubr.msk.f32.gmra.mrb[6].mxu1 %vm207_vm1, %v196_v22 }
  0xe5   : > { %v305_v23 = vpop.f32.mrb[0].mxu0  ;;  %v329_v24 = vpop.f32.mrb[0].mxu1 }
  0xe6   : > { %352 = vst [vmem:[%s712_s17] sm:$0xff] %v305_v23  ;;  %v307_v25 = vpop.f32.mrb[1].mxu0  ;;  %360 = vst [vmem:[%s712_s17 + $0x40] sm:$0xff] %v329_v24  ;;  %v331_v26 = vpop.f32.mrb[1].mxu1  ;;  %v418_v29 = vmul.f32 %v305_v23, %v305_v23  ;;  %v426_v57 = vmul.f32 %v329_v24, %v329_v24 }
  0xe7   : > { %353 = vst [vmem:[%s712_s17 + $0x8] sm:$0xff] %v307_v25  ;;  %361 = vst [vmem:[%s712_s17 + $0x48] sm:$0xff] %v331_v26  ;;  %v419_v34 = vmul.f32 %v307_v25, %v307_v25  ;;  %v427_v60 = vmul.f32 %v331_v26, %v331_v26 }
  0xe9   : > { %v311_v27 = vpop.f32.mrb[2].mxu0  ;;  %v335_v28 = vpop.f32.mrb[2].mxu1 }
  0xea   : > { %354 = vst [vmem:[%s712_s17 + $0x10] sm:$0xff] %v311_v27  ;;  %v368_v30 = vadd.f32 %v311_v27, %v305_v23  ;;  %v420_v31 = vmul.f32 %v311_v27, %v311_v27  ;;  %v313_v32 = vpop.f32.mrb[3].mxu0  ;;  %362 = vst [vmem:[%s712_s17 + $0x50] sm:$0xff] %v335_v28  ;;  %v337_v33 = vpop.f32.mrb[3].mxu1  ;;  %v428_v63 = vmul.f32 %v335_v28, %v335_v28 }
  0xeb   : > { %355 = vst [vmem:[%s712_s17 + $0x18] sm:$0xff] %v313_v32  ;;  %v381_v35 = vadd.f32 %v313_v32, %v307_v25  ;;  %v421_v36 = vmul.f32 %v313_v32, %v313_v32  ;;  %363 = vst [vmem:[%s712_s17 + $0x58] sm:$0xff] %v337_v33  ;;  %v429_v2 = vmul.f32 %v337_v33, %v337_v33 }
  0xec   : > { %v434_v37 = vadd.f32 %v420_v31, %v418_v29 }
  0xed   : > { %v447_v38 = vadd.f32 %v421_v36, %v419_v34  ;;  %v317_v39 = vpop.f32.mrb[4].mxu0  ;;  %v341_v40 = vpop.f32.mrb[4].mxu1 }
  0xee   : > { %356 = vst [vmem:[%s712_s17 + $0x20] sm:$0xff] %v317_v39  ;;  %v369_v41 = vadd.f32 %v368_v30, %v317_v39  ;;  %v422_v42 = vmul.f32 %v317_v39, %v317_v39  ;;  %v319_v43 = vpop.f32.mrb[5].mxu0  ;;  %364 = vst [vmem:[%s712_s17 + $0x60] sm:$0xff] %v341_v40  ;;  %v343_v44 = vpop.f32.mrb[5].mxu1  ;;  %v430_v6 = vmul.f32 %v341_v40, %v341_v40 }
  0xef   : > { %357 = vst [vmem:[%s712_s17 + $0x28] sm:$0xff] %v319_v43  ;;  %v382_v45 = vadd.f32 %v381_v35, %v319_v43  ;;  %v423_v46 = vmul.f32 %v319_v43, %v319_v43  ;;  %365 = vst [vmem:[%s712_s17 + $0x68] sm:$0xff] %v343_v44  ;;  %v431_v10 = vmul.f32 %v343_v44, %v343_v44 }
  0xf0   : > { %v435_v47 = vadd.f32 %v434_v37, %v422_v42 }
  0xf1   : > { %v448_v48 = vadd.f32 %v447_v38, %v423_v46  ;;  %v323_v49 = vpop.f32.mrb[6].mxu0  ;;  %v347_v50 = vpop.f32.mrb[6].mxu1 }
  0xf2   : > { %358 = vst [vmem:[%s712_s17 + $0x30] sm:$0xff] %v323_v49  ;;  %v370_v51 = vadd.f32 %v369_v41, %v323_v49  ;;  %v424_v52 = vmul.f32 %v323_v49, %v323_v49  ;;  %v325_v53 = vpop.f32.mrb[7].mxu0  ;;  %366 = vst [vmem:[%s712_s17 + $0x70] sm:$0xff] %v347_v50  ;;  %v349_v54 = vpop.f32.mrb[7].mxu1  ;;  %v432_v8 = vmul.f32 %v347_v50, %v347_v50 }
  0xf3   : > { %359 = vst [vmem:[%s712_s17 + $0x38] sm:$0xff] %v325_v53  ;;  %v383_v55 = vadd.f32 %v382_v45, %v325_v53  ;;  %v425_v56 = vmul.f32 %v325_v53, %v325_v53  ;;  %367 = vst [vmem:[%s712_s17 + $0x78] sm:$0xff] %v349_v54  ;;  %v433_v12 = vmul.f32 %v349_v54, %v349_v54 }
  0xf4   : > { %v371_v58 = vadd.f32 %v370_v51, %v329_v24  ;;  %v436_v59 = vadd.f32 %v435_v47, %v424_v52  ;;  %v632_v24 = vmov 1966171168  }
  0xf5   : > { %v384_v61 = vadd.f32 %v383_v55, %v331_v26  ;;  %v449_v62 = vadd.f32 %v448_v48, %v425_v56  ;;  %v398_v25 = vunpack.c.l.s4 %v632_v24  ;;  %v400_v26 = vlaneseq }
  0xf6   : > { %v437_v0 = vadd.f32 %v436_v59, %v426_v57  ;;  %v372_v1 = vadd.f32 %v371_v58, %v335_v28 }
  0xf7   : > { %v450_v3 = vadd.f32 %v449_v62, %v427_v60  ;;  %v385_v4 = vadd.f32 %v384_v61, %v337_v33  ;;  %v399_v35 = vunpack.c.0.s8 %v398_v25  ;;  %v401_v36 = vshrl.u32 %v400_v26, 7 }
  0xf8   : > { %v373_v5 = vadd.f32 %v372_v1, %v341_v40  ;;  %v438_v7 = vadd.f32 %v437_v0, %v428_v63  ;;  %vm414_vm2 = vcmp.lt.s32.totalorder %v400_v26, 256 }
  0xf9   : > { %v386_v9 = vadd.f32 %v385_v4, %v343_v44  ;;  %v451_v11 = vadd.f32 %v450_v3, %v429_v2  ;;  %v402_v45 = vsub.s32 %v399_v35, %v401_v36 }
  0xfa   : > { %v439_v13 = vadd.f32 %v438_v7, %v430_v6  ;;  %v374_v14 = vadd.f32 %v373_v5, %v347_v50 }
  0xfb   : > { %v452_v15 = vadd.f32 %v451_v11, %v431_v10  ;;  %v387_v16 = vadd.f32 %v386_v9, %v349_v54 }
  0xfc   : > { %v375_v17 = vrot.slane %v374_v14, 4  ;;  %v440_v18 = vadd.f32 %v439_v13, %v432_v8 }
  0xfd   : > { %v388_v19 = vrot.slane %v387_v16, 4  ;;  %v453_v20 = vadd.f32 %v452_v15, %v433_v12 }
  0xfe   : > { %v376_v21 = vadd.f32 %v375_v17, %v374_v14  ;;  %v441_v22 = vrot.slane %v440_v18, 4 }
  0xff   : > { %v389_v23 = vadd.f32 %v388_v19, %v387_v16  ;;  %v454_v27 = vrot.slane %v453_v20, 4 }
 0x100   : > { %v377_v28 = vrot.slane %v376_v21, 2  ;;  %v442_v29 = vadd.f32 %v441_v22, %v440_v18 }
 0x101   : > { %v390_v30 = vrot.slane %v389_v23, 2  ;;  %v455_v31 = vadd.f32 %v454_v27, %v453_v20 }
 0x102   : > { %v378_v32 = vadd.f32 %v377_v28, %v376_v21  ;;  %v443_v33 = vrot.slane %v442_v29, 2 }
 0x103   : > { %v391_v34 = vadd.f32 %v390_v30, %v389_v23  ;;  %v456_v37 = vrot.slane %v455_v31, 2 }
 0x104   : > { %v379_v38 = vrot.slane %v378_v32, 1  ;;  %v444_v39 = vadd.f32 %v443_v33, %v442_v29 }
 0x105   : > { %v392_v40 = vrot.slane %v391_v34, 1  ;;  %v457_v41 = vadd.f32 %v456_v37, %v455_v31 }
 0x106   : > { %v380_v42 = vadd.f32 %v379_v38, %v378_v32  ;;  %v445_v43 = vrot.slane %v444_v39, 1 }
 0x107   : > { %v393_v44 = vadd.f32 %v392_v40, %v391_v34  ;;  %v458_v46 = vrot.slane %v457_v41, 1 }
 0x108   : > { %v446_v47 = vadd.f32 %v445_v43, %v444_v39 }
 0x109   : > { %v396_v48 = vcombine.low %v380_v42, %v393_v44  ;;  %v459_v49 = vadd.f32 %v458_v46, %v457_v41 }
 0x10b   : > { %v403_v50 = vrot.slane %v396_v48, %v402_v45  ;;  %v462_v51 = vcombine.low %v446_v47, %v459_v49 }
 0x10d   : > { %v410_v52 = vrot.slane %v403_v50, %v402_v45  ;;  %v469_v53 = vrot.slane %v462_v51, %v402_v45 }
 0x10f   : > { %416 = vst.msk [vmem:[%s188_s21] ss:$8 sm:$0x3] %vm414_vm2, %v410_v52  ;;  %v476_v54 = vrot.slane %v469_v53, %v402_v45 }
 0x111   : > { %594 = vst.msk [vmem:[%s188_s21 + $0x1] ss:$8 sm:$0x3] %vm414_vm2, %v476_v54 }
 0x112 PF: > { %s14_s12 = sadd.s32 1, %s629_s12  }
 0x113   : > { %p11_p5 = scmp.ge.s32.totalorder %s14_s12, 4  }
 0x115   :  { %13 = sbr.rel (!%p11_p5) target bundleno = 1 (0x1), region = 71 }

// kernel: basic_block_forward.7
= control target key start
LH: loop header
LB: loop body
LE: loop exit
PB: predicated region body
PF: predicated region fallthrough
CT: control target
= control target key end

     0   :  { %s524_s12 = smov 0   ;;  %s526_s13 = smov 0   ;;  %s598_s0 = inlined_call_operand.vmem [shape: f32[128,128], index: 0, kind: input, shape index: {}]   ;;  %s599_s1 = inlined_call_operand.vmem [shape: f32[128,256], index: 1, kind: input, shape index: {}]   ;;  %s600_s2 = inlined_call_operand.vmem [shape: f32[8,128], index: 2, kind: input, shape index: {}]   ;;  %s601_s3 = inlined_call_operand.vmem [shape: f32[128,128], index: 3, kind: output, shape index: {}]  }
   0x1   :  { %s528_s14 = smov 0  }
   0x2 LB: > { %s428_s15 = sadd.s32 4294967295, %s502_s14   ;;  %s541_s16 = sadd.s32 1, %s502_s14   ;;  %s502_s14 = sphi %s528_s14, %s604_s14   ;;  %s498_s13 = sphi %s526_s13, %s603_s13   ;;  %s494_s12 = sphi %s524_s12, %s602_s12  }
   0x3   : > { %s43_s17 = ssub.s32 %s502_s14, %s541_s16  ;;  %s46_s18 = sadd.s32 1, %s498_s13 }
   0x4   : > { %p44_p0 = scmp.eq.s32.totalorder %s43_s17, 0  ;;  %p53_p1 = scmp.ne.s32.totalorder %s498_s13, %s494_s12 }
   0x5   : > { %p54_p2 = scmp.eq.s32.totalorder %s502_s14, 0  ;;  %p431_p4 = scmp.ge.s32.totalorder %s502_s14, 2 }
   0x6   : > { %s550_s19 = scalar_select %p44_p0, %s498_s13, %s46_s18  }
   0x7   : > { %p55_p3 = por %p54_p2, %p53_p1  ;;  %129 = sbr.rel (%p431_p4) target bundleno = 22 (0x16), region = 20 }
   0xe   : > { %141 = sbr.rel (!%p55_p3) target bundleno = 22 (0x16), region = 28  ;;  %s143_s20 = sand.u32 (%p55_p3), 1, %s498_s13  }
   0xf   : > { %s455_s21 = sshll.u32 (%p55_p3), %s502_s14, 7  ;;  %s432_s22 = sshll.u32 (%p55_p3), %s143_s20, 6 }
  0x10   : > { %s380_s25 = scalar_lea.vmem (%p55_p3), %s599_s1, %s455_s21  ;;  %s145_s26 = scalar_lea.vmem (%p55_p3), [#allocation2], %s432_s22 }
  0x11   : > { %v435_v0 = vld [vmem:[%s380_s25 + $0x8] sm:$0xff] (%p55_p3)  ;;  %v436_v1 = vld [vmem:[%s380_s25 + $0x18] sm:$0xff] (%p55_p3) }
  0x12   : > { %v437_v2 = vld [vmem:[%s380_s25 + $0x28] sm:$0xff] (%p55_p3)  ;;  %193 = vst [vmem:[%s145_s26] sm:$0xff] (%p55_p3), %v435_v0  ;;  %195 = vst [vmem:[%s145_s26 + $0x8] sm:$0xff] (%p55_p3), %v436_v1  ;;  %v438_v3 = vld [vmem:[%s380_s25 + $0x38] sm:$0xff] (%p55_p3) }
  0x13   : > { %197 = vst [vmem:[%s145_s26 + $0x10] sm:$0xff] (%p55_p3), %v437_v2  ;;  %v439_v4 = vld [vmem:[%s380_s25 + $0x48] sm:$0xff] (%p55_p3)  ;;  %v440_v5 = vld [vmem:[%s380_s25 + $0x58] sm:$0xff] (%p55_p3)  ;;  %199 = vst [vmem:[%s145_s26 + $0x18] sm:$0xff] (%p55_p3), %v438_v3 }
  0x14   : > { %201 = vst [vmem:[%s145_s26 + $0x20] sm:$0xff] (%p55_p3), %v439_v4  ;;  %203 = vst [vmem:[%s145_s26 + $0x28] sm:$0xff] (%p55_p3), %v440_v5  ;;  %v441_v6 = vld [vmem:[%s380_s25 + $0x68] sm:$0xff] (%p55_p3)  ;;  %v442_v7 = vld [vmem:[%s380_s25 + $0x78] sm:$0xff] (%p55_p3) }
  0x15   : > { %205 = vst [vmem:[%s145_s26 + $0x30] sm:$0xff] %v441_v6  ;;  %207 = vst [vmem:[%s145_s26 + $0x38] sm:$0xff] %v442_v7 }
  0x16 PF: > { %p443_p5 = scmp.ge.s32.totalorder %s502_s14, 1  ;;  %p212_p6 = scmp.lt.s32.totalorder %s502_s14, 3 }
  0x18   : > { %p213_p7 = pnand %p443_p5, %p212_p6 }
  0x19   : > { %s219_s27 = sand.u32 (!%p213_p7), 1, %s494_s12   ;;  %s445_s28 = sshll.u32 (!%p213_p7), %s428_s15, 3  ;;  %v451_v8 = vld [vmem:[%s600_s2 + $0x2] ss:$0 sm:$0xff] (!%p213_p7)  ;;  %v452_v9 = vld [vmem:[%s600_s2 + $0x3] ss:$0 sm:$0xff] (!%p213_p7) }
  0x1a   : > { %216 = sbr.rel (%p213_p7) target bundleno = 49 (0x31), region = 66  ;;  %s444_s29 = sshll.u32 (!%p213_p7), %s219_s27, 6  ;;  %v449_v19 = vld [vmem:[%s600_s2] ss:$0 sm:$0xff] (!%p213_p7)  ;;  %v450_v25 = vld [vmem:[%s600_s2 + $0x1] ss:$0 sm:$0xff] (!%p213_p7) }
  0x1b   : > { %p248_p8 = scmp.lt.s32.totalorder (!%p213_p7), %s445_s28, 15  ;;  %s221_s7 = scalar_lea.vmem (!%p213_p7), [#allocation2], %s444_s29 }
  0x1c   : > { %v294_v10 = vld [vmem:[%s221_s7] sm:$0xff] (!%p213_p7)  ;;  %v295_v11 = vld [vmem:[%s221_s7 + $0x8] sm:$0xff] (!%p213_p7)  ;;  %v296_v12 = vld [vmem:[%s221_s7 + $0x10] sm:$0xff] (!%p213_p7) }
  0x1d   : > { %v307_v13 = vmul.f32 (!%p213_p7), %v451_v8, %v294_v10  ;;  %v308_v14 = vmul.f32 (!%p213_p7), %v451_v8, %v295_v11  ;;  %v309_v15 = vmul.f32 (!%p213_p7), %v451_v8, %v296_v12  ;;  %v297_v16 = vld [vmem:[%s221_s7 + $0x18] sm:$0xff] (!%p213_p7)  ;;  %v298_v17 = vld [vmem:[%s221_s7 + $0x20] sm:$0xff] (!%p213_p7)  ;;  %v299_v18 = vld [vmem:[%s221_s7 + $0x28] sm:$0xff] (!%p213_p7) }
  0x1e   : > { %v310_v20 = vmul.f32 (!%p213_p7), %v451_v8, %v297_v16  ;;  %v311_v21 = vmul.f32 (!%p213_p7), %v451_v8, %v298_v17  ;;  %v312_v22 = vmul.f32 (!%p213_p7), %v451_v8, %v299_v18  ;;  %v300_v23 = vld [vmem:[%s221_s7 + $0x30] sm:$0xff] (!%p213_p7)  ;;  %v301_v24 = vld [vmem:[%s221_s7 + $0x38] sm:$0xff] (!%p213_p7) }
  0x1f   : > { %v320_v26 = vadd.f32 (!%p213_p7), %v452_v9, %v307_v13  ;;  %v321_v27 = vadd.f32 (!%p213_p7), %v452_v9, %v308_v14  ;;  %v322_v28 = vadd.f32 (!%p213_p7), %v452_v9, %v309_v15  ;;  %v313_v29 = vmul.f32 (!%p213_p7), %v451_v8, %v300_v23 }
  0x20   : > { %v323_v33 = vadd.f32 (!%p213_p7), %v452_v9, %v310_v20  ;;  %v324_v34 = vadd.f32 (!%p213_p7), %v452_v9, %v311_v21  ;;  %v325_v35 = vadd.f32 (!%p213_p7), %v452_v9, %v312_v22  ;;  %v314_v36 = vmul.f32 (!%p213_p7), %v451_v8, %v301_v24 }
  0x21   : > { %s606_s28 = smov (!%p248_p8, %s445_s28), 15  ;;  %v326_v43 = vadd.f32 %v452_v9, %v313_v29 }
  0x22   : > { %s446_s8 = sshll.u32 %s606_s28, 3  ;;  %v327_v49 = vadd.f32 %v452_v9, %v314_v36 }
  0x23   : > { %s251_s14 = scalar_lea.vmem %s598_s0, %s446_s8  ;;  %s258_s21 = scalar_lea.vmem %s601_s3, %s446_s8 }
  0x24   : > { %v260_v30 = vld [vmem:[%s251_s14] sm:$0xff]  ;;  %v261_v31 = vld [vmem:[%s251_s14 + $0x8] sm:$0xff]  ;;  %v262_v32 = vld [vmem:[%s251_s14 + $0x10] sm:$0xff] }
  0x25   : > { %v273_v37 = vmul.f32 %v449_v19, %v260_v30  ;;  %v274_v38 = vmul.f32 %v449_v19, %v261_v31  ;;  %v275_v39 = vmul.f32 %v449_v19, %v262_v32  ;;  %v263_v40 = vld [vmem:[%s251_s14 + $0x18] sm:$0xff]  ;;  %v264_v41 = vld [vmem:[%s251_s14 + $0x20] sm:$0xff]  ;;  %v265_v42 = vld [vmem:[%s251_s14 + $0x28] sm:$0xff] }
  0x26   : > { %v276_v44 = vmul.f32 %v449_v19, %v263_v40  ;;  %v277_v45 = vmul.f32 %v449_v19, %v264_v41  ;;  %v278_v46 = vmul.f32 %v449_v19, %v265_v42  ;;  %v266_v47 = vld [vmem:[%s251_s14 + $0x30] sm:$0xff]  ;;  %v267_v48 = vld [vmem:[%s251_s14 + $0x38] sm:$0xff] }
  0x27   : > { %v286_v50 = vadd.f32 %v450_v25, %v273_v37  ;;  %v287_v51 = vadd.f32 %v450_v25, %v274_v38  ;;  %v288_v52 = vadd.f32 %v450_v25, %v275_v39  ;;  %v279_v53 = vmul.f32 %v449_v19, %v266_v47 }
  0x28   : > { %v289_v54 = vadd.f32 %v450_v25, %v276_v44  ;;  %v290_v55 = vadd.f32 %v450_v25, %v277_v45  ;;  %v291_v56 = vadd.f32 %v450_v25, %v278_v46  ;;  %v280_v57 = vmul.f32 %v449_v19, %v267_v48 }
  0x29   : > { %v328_v58 = vadd.f32 %v320_v26, %v286_v50  ;;  %v329_v59 = vadd.f32 %v321_v27, %v287_v51  ;;  %v330_v60 = vadd.f32 %v322_v28, %v288_v52  ;;  %v292_v61 = vadd.f32 %v450_v25, %v279_v53 }
  0x2a   : > { %v331_v62 = vadd.f32 %v323_v33, %v289_v54  ;;  %v332_v63 = vadd.f32 %v324_v34, %v290_v55  ;;  %v333_v0 = vadd.f32 %v325_v35, %v291_v56  ;;  %v293_v1 = vadd.f32 %v450_v25, %v280_v57 }
  0x2b   : > { %v336_v2 = vmax.f32 %v328_v58, 0.0  ;;  %v337_v3 = vmax.f32 %v329_v59, 0.0  ;;  %v338_v4 = vmax.f32 %v330_v60, 0.0  ;;  %v334_v5 = vadd.f32 %v326_v43, %v292_v61 }
  0x2c   : > { %v339_v6 = vmax.f32 %v331_v62, 0.0  ;;  %v340_v7 = vmax.f32 %v332_v63, 0.0  ;;  %v341_v8 = vmax.f32 %v333_v0, 0.0  ;;  %v335_v9 = vadd.f32 %v327_v49, %v293_v1 }
  0x2d   : > { %344 = vst [vmem:[%s258_s21] sm:$0xff] %v336_v2  ;;  %345 = vst [vmem:[%s258_s21 + $0x8] sm:$0xff] %v337_v3  ;;  %v342_v10 = vmax.f32 %v334_v5, 0.0 }
  0x2e   : > { %346 = vst [vmem:[%s258_s21 + $0x10] sm:$0xff] %v338_v4  ;;  %347 = vst [vmem:[%s258_s21 + $0x18] sm:$0xff] %v339_v6  ;;  %v343_v11 = vmax.f32 %v335_v9, 0.0 }
  0x2f   : > { %348 = vst [vmem:[%s258_s21 + $0x20] sm:$0xff] %v340_v7  ;;  %349 = vst [vmem:[%s258_s21 + $0x28] sm:$0xff] %v341_v8 }
  0x30   : > { %350 = vst [vmem:[%s258_s21 + $0x30] sm:$0xff] %v342_v10  ;;  %351 = vst [vmem:[%s258_s21 + $0x38] sm:$0xff] %v343_v11 }
  0x31 PF: > { %p10_p9 = scmp.ge.s32.totalorder %s541_s16, 4   ;;  %s602_s12 = smov %s498_s13 }
  0x32   : > { %s603_s13 = smov %s550_s19  ;;  %s604_s14 = smov %s541_s16 }
  0x33   :  { %12 = sbr.rel (!%p10_p9) target bundleno = 2 (0x2), region = 108 }

// kernel: basic_block_forward.6
= control target key start
LH: loop header
LB: loop body
LE: loop exit
PB: predicated region body
PF: predicated region fallthrough
CT: control target
= control target key end

     0   :  { %s2745_s12 = smov 0   ;;  %s3348_s0 = inlined_call_operand.vmem [shape: f32[2,10,10,128], index: 0, kind: input, shape index: {}]   ;;  %s3349_s1 = inlined_call_operand.vmem [shape: f32[9,128,128], index: 1, kind: input, shape index: {}]   ;;  %s3350_s2 = inlined_call_operand.vmem [shape: f32[128,128], index: 2, kind: output, shape index: {0}]   ;;  %s3351_s3 = inlined_call_operand.vmem [shape: f32[16,128], index: 3, kind: output, shape index: {1}]  }
   0x1 LB: > { %s2751_s13 = sadd.s32 4294967295, %s2723_s12   ;;  %p1545_p0 = scmp.ge.s32.totalorder %s2723_s12, 1  ;;  %s2723_s12 = sphi %s2745_s12, %s14_s12  }
   0x2   : > { %p140_p1 = scmp.lt.s32.totalorder %s2723_s12, 3 }
   0x4   : > { %p141_p2 = pnand %p1545_p0, %p140_p1 }
   0x5   : > { %v1550_v0 = vld [vmem:[%s3349_s1 + $0x80] sm:$0xff] (!%p141_p2)  ;;  %v1551_v1 = vld [vmem:[%s3349_s1 + $0x88] sm:$0xff] (!%p141_p2)  ;;  %p168_p3 = scmp.lt.s32.totalorder (!%p141_p2), %s2751_s13, 1  ;;  %v1552_v5 = vld [vmem:[%s3349_s1 + $0x90] sm:$0xff] (!%p141_p2) }
   0x6   : > { %144 = sbr.rel (%p141_p2) target bundleno = 415 (0x19f), region = 28  ;;  %v1614_v2 = vld [vmem:[%s3349_s1 + $0x200] sm:$0xff] (!%p141_p2)  ;;  %v2340_v3 = vpack.c.bf16 (!%p141_p2), %v1551_v1, %v1550_v0  ;;  %v1615_v4 = vld [vmem:[%s3349_s1 + $0x208] sm:$0xff] (!%p141_p2)  ;;  %v1553_v6 = vld [vmem:[%s3349_s1 + $0x98] sm:$0xff] (!%p141_p2) }
   0x7   : > { %v2468_v7 = vpack.c.bf16 (!%p141_p2), %v1615_v4, %v1614_v2  ;;  %v2344_v8 = vpack.c.bf16 (!%p141_p2), %v1553_v6, %v1552_v5  ;;  %v1616_v9 = vld [vmem:[%s3349_s1 + $0x210] sm:$0xff] (!%p141_p2)  ;;  %v1617_v10 = vld [vmem:[%s3349_s1 + $0x218] sm:$0xff] (!%p141_p2)  ;;  %v1554_v11 = vld [vmem:[%s3349_s1 + $0xa0] sm:$0xff] (!%p141_p2) }
   0x8   : > { %2341 = vmatprep.subr.bf16.mxu1 (!%p141_p2), %v2340_v3  ;;  %v2472_v12 = vpack.c.bf16 (!%p141_p2), %v1617_v10, %v1616_v9  ;;  %v1555_v13 = vld [vmem:[%s3349_s1 + $0xa8] sm:$0xff] (!%p141_p2)  ;;  %v1618_v14 = vld [vmem:[%s3349_s1 + $0x220] sm:$0xff] (!%p141_p2)  ;;  %v1556_v18 = vld [vmem:[%s3349_s1 + $0xb0] sm:$0xff] (!%p141_p2) }
   0x9   : > { %v1619_v15 = vld [vmem:[%s3349_s1 + $0x228] sm:$0xff] (!%p141_p2)  ;;  %2469 = vmatprep.subr.bf16.mxu0 (!%p141_p2), %v2468_v7  ;;  %2343 = vmatpush3.bf16.msra.mxu1 (!%p141_p2), %v2340_v3  ;;  %v2348_v16 = vpack.c.bf16 (!%p141_p2), %v1555_v13, %v1554_v11  ;;  %v1557_v19 = vld [vmem:[%s3349_s1 + $0xb8] sm:$0xff] (!%p141_p2)  ;;  %v1620_v20 = vld [vmem:[%s3349_s1 + $0x230] sm:$0xff] (!%p141_p2) }
   0xa   : > { %2471 = vmatpush3.bf16.msra.mxu0 (!%p141_p2), %v2468_v7  ;;  %2345 = vmatprep.subr.bf16.mxu1 (!%p141_p2), %v2344_v8  ;;  %v2476_v17 = vpack.c.bf16 (!%p141_p2), %v1619_v15, %v1618_v14  ;;  %v1621_v21 = vld [vmem:[%s3349_s1 + $0x238] sm:$0xff] (!%p141_p2)  ;;  %v2352_v22 = vpack.c.bf16 (!%p141_p2), %v1557_v19, %v1556_v18  ;;  %v1558_v24 = vld [vmem:[%s3349_s1 + $0xc0] sm:$0xff] (!%p141_p2)  ;;  %v1559_v25 = vld [vmem:[%s3349_s1 + $0xc8] sm:$0xff] (!%p141_p2) }
   0xb   : > { %2473 = vmatprep.subr.bf16.mxu0 (!%p141_p2), %v2472_v12  ;;  %v2480_v23 = vpack.c.bf16 (!%p141_p2), %v1621_v21, %v1620_v20  ;;  %v1622_v27 = vld [vmem:[%s3349_s1 + $0x240] sm:$0xff] (!%p141_p2)  ;;  %v1623_v28 = vld [vmem:[%s3349_s1 + $0x248] sm:$0xff] (!%p141_p2)  ;;  %v2356_v30 = vpack.c.bf16 (!%p141_p2), %v1559_v25, %v1558_v24  ;;  %v1560_v32 = vld [vmem:[%s3349_s1 + $0xd0] sm:$0xff] (!%p141_p2) }
   0xc   : > { %v2484_v31 = vpack.c.bf16 (!%p141_p2), %v1623_v28, %v1622_v27  ;;  %v1561_v33 = vld [vmem:[%s3349_s1 + $0xd8] sm:$0xff] (!%p141_p2)  ;;  %v1624_v34 = vld [vmem:[%s3349_s1 + $0x250] sm:$0xff] (!%p141_p2)  ;;  %v1562_v38 = vld [vmem:[%s3349_s1 + $0xe0] sm:$0xff] (!%p141_p2) }
   0xd   : > { %s2784_s5 = scalar_select %p168_p3, %s2751_s13, 1  ;;  %2347 = vmatpush3.bf16.msra.mxu1 %v2344_v8  ;;  %v1625_v35 = vld [vmem:[%s3349_s1 + $0x258] sm:$0xff]  ;;  %v2360_v36 = vpack.c.bf16 %v1561_v33, %v1560_v32  ;;  %v1563_v39 = vld [vmem:[%s3349_s1 + $0xe8] sm:$0xff]  ;;  %v1626_v40 = vld [vmem:[%s3349_s1 + $0x260] sm:$0xff] }
   0xe   : > { %2475 = vmatpush3.bf16.msra.mxu0 %v2472_v12  ;;  %2349 = vmatprep.subr.bf16.mxu1 %v2348_v16  ;;  %v2488_v37 = vpack.c.bf16 %v1625_v35, %v1624_v34  ;;  %v1627_v41 = vld [vmem:[%s3349_s1 + $0x268] sm:$0xff]  ;;  %v2364_v42 = vpack.c.bf16 %v1563_v39, %v1562_v38  ;;  %v1564_v44 = vld [vmem:[%s3349_s1 + $0xf0] sm:$0xff]  ;;  %v1565_v45 = vld [vmem:[%s3349_s1 + $0xf8] sm:$0xff] }
   0xf   : > { %s2708_s14 = smul.u32 160, %s2784_s5  ;;  %2477 = vmatprep.subr.bf16.mxu0 %v2476_v17  ;;  %v2492_v43 = vpack.c.bf16 %v1627_v41, %v1626_v40  ;;  %v1628_v46 = vld [vmem:[%s3349_s1 + $0x270] sm:$0xff]  ;;  %v1629_v47 = vld [vmem:[%s3349_s1 + $0x278] sm:$0xff]  ;;  %v2368_v48 = vpack.c.bf16 %v1565_v45, %v1564_v44  ;;  %v191_v50 = vld [vmem:[%s3349_s1] sm:$0xff] }
  0x10   : > { %v2496_v49 = vpack.c.bf16 %v1629_v47, %v1628_v46  ;;  %v192_v51 = vld [vmem:[%s3349_s1 + $0x8] sm:$0xff]  ;;  %v1638_v52 = vld [vmem:[%s3349_s1 + $0x280] sm:$0xff]  ;;  %v193_v56 = vld [vmem:[%s3349_s1 + $0x10] sm:$0xff] }
  0x11   : > { %s2811_s25 = scalar_lea.vmem %s3348_s0, %s2708_s14  ;;  %2351 = vmatpush3.bf16.msra.mxu1 %v2348_v16  ;;  %v1639_v53 = vld [vmem:[%s3349_s1 + $0x288] sm:$0xff]  ;;  %v2372_v54 = vpack.c.bf16 %v192_v51, %v191_v50  ;;  %v194_v57 = vld [vmem:[%s3349_s1 + $0x18] sm:$0xff]  ;;  %v1640_v58 = vld [vmem:[%s3349_s1 + $0x290] sm:$0xff] }
  0x12   : > { %v207_v26 = vld [vmem:[%s2811_s25 + $0x1] sm:$0xff]  ;;  %v1606_v29 = vld [vmem:[%s2811_s25 + $0x11] sm:$0xff]  ;;  %2479 = vmatpush3.bf16.msra.mxu0 %v2476_v17  ;;  %2353 = vmatprep.subr.bf16.mxu1 %v2352_v22  ;;  %v2500_v55 = vpack.c.bf16 %v1639_v53, %v1638_v52  ;;  %v2376_v61 = vpack.c.bf16 %v194_v57, %v193_v56 }
  0x13   : > { %1976 = vmatprep.mubr.f32.mxu1 %v207_v26  ;;  %2152 = vmatprep.mubr.f32.mxu0 %v1606_v29  ;;  %v1641_v59 = vld [vmem:[%s3349_s1 + $0x298] sm:$0xff]  ;;  %v2888_v60 = vld [vmem:[%s2811_s25 + $0x21] sm:$0xff]  ;;  %v197_v7 = vld [vmem:[%s3349_s1 + $0x30] sm:$0xff] }
  0x14   : > { %2481 = vmatprep.subr.bf16.mxu0 %v2480_v23  ;;  %v2504_v62 = vpack.c.bf16 %v1641_v59, %v1640_v58  ;;  %v195_v63 = vld [vmem:[%s3349_s1 + $0x20] sm:$0xff]  ;;  %v196_v0 = vld [vmem:[%s3349_s1 + $0x28] sm:$0xff]  ;;  %v2904_v3 = vld [vmem:[%s2811_s25 + $0x31] sm:$0xff] }
  0x15   : > { %2355 = vmatpush3.bf16.msra.mxu1 %v2352_v22  ;;  %v1642_v1 = vld [vmem:[%s3349_s1 + $0x2a0] sm:$0xff]  ;;  %v1643_v2 = vld [vmem:[%s3349_s1 + $0x2a8] sm:$0xff]  ;;  %v2380_v4 = vpack.c.bf16 %v196_v0, %v195_v63  ;;  %v198_v8 = vld [vmem:[%s3349_s1 + $0x38] sm:$0xff] }
  0x16   : > { %2483 = vmatpush3.bf16.msra.mxu0 %v2480_v23  ;;  %2357 = vmatprep.subr.bf16.mxu1 %v2356_v30  ;;  %v2907_v5 = vld [vmem:[%s2811_s25 + $0x41] sm:$0xff]  ;;  %v2508_v6 = vpack.c.bf16 %v1643_v2, %v1642_v1  ;;  %v1644_v9 = vld [vmem:[%s3349_s1 + $0x2b0] sm:$0xff]  ;;  %v1645_v10 = vld [vmem:[%s3349_s1 + $0x2b8] sm:$0xff]  ;;  %v2384_v12 = vpack.c.bf16 %v198_v8, %v197_v7 }
  0x17   : > { %2485 = vmatprep.subr.bf16.mxu0 %v2484_v31  ;;  %v2926_v11 = vld [vmem:[%s2811_s25 + $0x51] sm:$0xff]  ;;  %v2929_v13 = vld [vmem:[%s2811_s25 + $0x61] sm:$0xff]  ;;  %v2512_v14 = vpack.c.bf16 %v1645_v10, %v1644_v9 }
  0x18   : > { %v199_v15 = vld [vmem:[%s3349_s1 + $0x40] sm:$0xff]  ;;  %v200_v16 = vld [vmem:[%s3349_s1 + $0x48] sm:$0xff]  ;;  %v2948_v19 = vld [vmem:[%s2811_s25 + $0x71] sm:$0xff] }
  0x19   : > { %2359 = vmatpush3.bf16.msra.mxu1 %v2356_v30  ;;  %v1646_v17 = vld [vmem:[%s3349_s1 + $0x2c0] sm:$0xff]  ;;  %v1647_v18 = vld [vmem:[%s3349_s1 + $0x2c8] sm:$0xff]  ;;  %v2388_v20 = vpack.c.bf16 %v200_v16, %v199_v15  ;;  %v201_v23 = vld [vmem:[%s3349_s1 + $0x50] sm:$0xff] }
  0x1a   : > { %2487 = vmatpush3.bf16.msra.mxu0 %v2484_v31  ;;  %2361 = vmatprep.subr.bf16.mxu1 %v2360_v36  ;;  %v2951_v21 = vld [vmem:[%s2811_s25 + $0x81] sm:$0xff]  ;;  %v2516_v22 = vpack.c.bf16 %v1647_v18, %v1646_v17  ;;  %v202_v24 = vld [vmem:[%s3349_s1 + $0x58] sm:$0xff]  ;;  %v1648_v25 = vld [vmem:[%s3349_s1 + $0x2d0] sm:$0xff] }
  0x1b   : > { %2489 = vmatprep.subr.bf16.mxu0 %v2488_v37  ;;  %v1649_v26 = vld [vmem:[%s3349_s1 + $0x2d8] sm:$0xff]  ;;  %v183_v27 = vld [vmem:[%s2811_s25] sm:$0xff]  ;;  %v204_v32 = vld [vmem:[%s3349_s1 + $0x68] sm:$0xff] }
  0x1c   : > { %v2971_v28 = vld [vmem:[%s2811_s25 + $0x12] sm:$0xff]  ;;  %v2520_v30 = vpack.c.bf16 %v1649_v26, %v1648_v25  ;;  %v203_v31 = vld [vmem:[%s3349_s1 + $0x60] sm:$0xff]  ;;  %v1651_v34 = vld [vmem:[%s3349_s1 + $0x2e8] sm:$0xff] }
  0x1d   : > { %2363 = vmatpush3.bf16.msra.mxu1 %v2360_v36  ;;  %v1650_v33 = vld [vmem:[%s3349_s1 + $0x2e0] sm:$0xff]  ;;  %v2396_v35 = vpack.c.bf16 %v204_v32, %v203_v31  ;;  %v206_v38 = vld [vmem:[%s3349_s1 + $0x78] sm:$0xff]  ;;  %v1652_v39 = vld [vmem:[%s3349_s1 + $0x2f0] sm:$0xff] }
  0x1e   : > { %2491 = vmatpush3.bf16.msra.mxu0 %v2488_v37  ;;  %2365 = vmatprep.subr.bf16.mxu1 %v2364_v42  ;;  %v2524_v36 = vpack.c.bf16 %v1651_v34, %v1650_v33  ;;  %v205_v37 = vld [vmem:[%s3349_s1 + $0x70] sm:$0xff]  ;;  %v1653_v40 = vld [vmem:[%s3349_s1 + $0x2f8] sm:$0xff]  ;;  %v1567_v44 = vld [vmem:[%s3349_s1 + $0x108] sm:$0xff] }
  0x1f   : > { %2493 = vmatprep.subr.bf16.mxu0 %v2492_v43  ;;  %v2400_v41 = vpack.c.bf16 %v206_v38, %v205_v37  ;;  %v1662_v45 = vld [vmem:[%s3349_s1 + $0x300] sm:$0xff]  ;;  %v1663_v46 = vld [vmem:[%s3349_s1 + $0x308] sm:$0xff]  ;;  %v1569_v50 = vld [vmem:[%s3349_s1 + $0x118] sm:$0xff] }
  0x20   : > { %v1664_v51 = vld [vmem:[%s3349_s1 + $0x310] sm:$0xff]  ;;  %v1665_v52 = vld [vmem:[%s3349_s1 + $0x318] sm:$0xff]  ;;  %v1570_v57 = vld [vmem:[%s3349_s1 + $0x120] sm:$0xff] }
  0x21   : > { %2367 = vmatpush3.bf16.msra.mxu1 %v2364_v42  ;;  %v2528_v42 = vpack.c.bf16 %v1653_v40, %v1652_v39  ;;  %v3023_v53 = vld [vmem:[%s2811_s25 + $0x10] sm:$0xff]  ;;  %v2536_v56 = vpack.c.bf16 %v1665_v52, %v1664_v51  ;;  %v1571_v58 = vld [vmem:[%s3349_s1 + $0x128] sm:$0xff]  ;;  %v1666_v59 = vld [vmem:[%s3349_s1 + $0x320] sm:$0xff] }
  0x22   : > { %2495 = vmatpush3.bf16.msra.mxu0 %v2492_v43  ;;  %2369 = vmatprep.subr.bf16.mxu1 %v2368_v48  ;;  %v1566_v43 = vld [vmem:[%s3349_s1 + $0x100] sm:$0xff]  ;;  %v3046_v63 = vld [vmem:[%s2811_s25 + $0x32] sm:$0xff]  ;;  %v2412_v1 = vpack.c.bf16 %v1571_v58, %v1570_v57  ;;  %v1579_v39 = vld [vmem:[%s3349_s1 + $0x168] sm:$0xff] }
  0x23   : > { %2497 = vmatprep.subr.bf16.mxu0 %v2496_v49  ;;  %v2404_v47 = vpack.c.bf16 %v1567_v44, %v1566_v43  ;;  %v3049_v0 = vld [vmem:[%s2811_s25 + $0x30] sm:$0xff]  ;;  %v3052_v2 = vld [vmem:[%s2811_s25 + $0x42] sm:$0xff]  ;;  %v1573_v7 = vld [vmem:[%s3349_s1 + $0x138] sm:$0xff] }
  0x24   : > { %v1668_v8 = vld [vmem:[%s3349_s1 + $0x330] sm:$0xff]  ;;  %v1669_v9 = vld [vmem:[%s3349_s1 + $0x338] sm:$0xff]  ;;  %v3070_v10 = vld [vmem:[%s2811_s25 + $0x40] sm:$0xff] }
  0x25   : > { %2371 = vmatpush3.bf16.msra.mxu1 %v2368_v48  ;;  %v2532_v48 = vpack.c.bf16 %v1663_v46, %v1662_v45  ;;  %v3080_v16 = vld [vmem:[%s2811_s25 + $0x62] sm:$0xff]  ;;  %v2544_v17 = vpack.c.bf16 %v1669_v9, %v1668_v8  ;;  %v3102_v25 = vld [vmem:[%s2811_s25 + $0x72] sm:$0xff] }
  0x26   : > { %2499 = vmatpush3.bf16.msra.mxu0 %v2496_v49  ;;  %2373 = vmatprep.subr.bf16.mxu1 %v2372_v54  ;;  %v1568_v49 = vld [vmem:[%s3349_s1 + $0x110] sm:$0xff]  ;;  %v1574_v18 = vld [vmem:[%s3349_s1 + $0x140] sm:$0xff]  ;;  %v1577_v32 = vld [vmem:[%s3349_s1 + $0x158] sm:$0xff] }
  0x27   : > { %2501 = vmatprep.subr.bf16.mxu0 %v2500_v55  ;;  %v3105_v26 = vld [vmem:[%s2811_s25 + $0x70] sm:$0xff]  ;;  %v1673_v34 = vld [vmem:[%s3349_s1 + $0x358] sm:$0xff]  ;;  %v1578_v38 = vld [vmem:[%s3349_s1 + $0x160] sm:$0xff] }
  0x28   : > { %1977 = vmatmul.mubr.f32.vlgmr.msra.gmra.mrb[0].mxu1 %v1606_v29  ;;  %v2392_v29 = vpack.c.bf16 %v202_v24, %v201_v23  ;;  %v1671_v23 = vld [vmem:[%s3349_s1 + $0x348] sm:$0xff]  ;;  %v3098_v24 = vld [vmem:[%s2811_s25 + $0x60] sm:$0xff]  ;;  %v1576_v31 = vld [vmem:[%s3349_s1 + $0x150] sm:$0xff] }
  0x29   : > { %2375 = vmatpush3.bf16.msra.mxu1 %v2372_v54  ;;  %2153 = vmatmul.mubr.f32.vlgmr.msra.gmra.mrb[0].mxu0 %v2888_v60  ;;  %v3026_v54 = vld [vmem:[%s2811_s25 + $0x22] sm:$0xff]  ;;  %v1672_v33 = vld [vmem:[%s3349_s1 + $0x350] sm:$0xff]  ;;  %v1581_v45 = vld [vmem:[%s3349_s1 + $0x178] sm:$0xff] }
  0x2a   : > { %2503 = vmatpush3.bf16.msra.mxu0 %v2500_v55  ;;  %2377 = vmatprep.subr.bf16.mxu1 %v2376_v61  ;;  %v2408_v55 = vpack.c.bf16 %v1569_v50, %v1568_v49  ;;  %v2552_v37 = vpack.c.bf16 %v1673_v34, %v1672_v33  ;;  %v1674_v40 = vld [vmem:[%s3349_s1 + $0x360] sm:$0xff]  ;;  %v1580_v44 = vld [vmem:[%s3349_s1 + $0x170] sm:$0xff]  ;;  %v1591_v51 = vld [vmem:[%s3349_s1 + $0x188] sm:$0xff] }
  0x2b   : > { %2505 = vmatprep.subr.bf16.mxu0 %v2504_v62  ;;  %1979 = vmatprep.mubr.f32.mxu1 %v2888_v60  ;;  %v1676_v46 = vld [vmem:[%s3349_s1 + $0x370] sm:$0xff]  ;;  %v1590_v50 = vld [vmem:[%s3349_s1 + $0x180] sm:$0xff]  ;;  %v1595_v8 = vld [vmem:[%s3349_s1 + $0x1a8] sm:$0xff] }
  0x2c   : > { %2155 = vmatprep.mubr.f32.mxu0 %v2904_v3  ;;  %1980 = vmatmul.mubr.f32.gmra.mrb[2].mxu1 %v2904_v3  ;;  %v1686_v52 = vld [vmem:[%s3349_s1 + $0x380] sm:$0xff]  ;;  %v1592_v58 = vld [vmem:[%s3349_s1 + $0x190] sm:$0xff]  ;;  %v1695_v34 = vld [vmem:[%s3349_s1 + $0x3c8] sm:$0xff] }
  0x2d   : > { %2379 = vmatpush3.bf16.msra.mxu1 %v2376_v61  ;;  %2156 = vmatmul.mubr.f32.gmra.mrb[2].mxu0 %v2907_v5  ;;  %v1667_v61 = vld [vmem:[%s3349_s1 + $0x328] sm:$0xff]  ;;  %v1690_v9 = vld [vmem:[%s3349_s1 + $0x3a0] sm:$0xff] }
  0x2e   : > { %2507 = vmatpush3.bf16.msra.mxu0 %v2504_v62  ;;  %2381 = vmatprep.subr.bf16.mxu1 %v2380_v4  ;;  %v3042_v62 = vld [vmem:[%s2811_s25 + $0x20] sm:$0xff] }
  0x2f   : > { %2509 = vmatprep.subr.bf16.mxu0 %v2508_v6  ;;  %1982 = vmatprep.mubr.f32.mxu1 %v2907_v5  ;;  %v1694_v33 = vld [vmem:[%s3349_s1 + $0x3c0] sm:$0xff] }
  0x30   : > { %2158 = vmatprep.mubr.f32.mxu0 %v2926_v11  ;;  %1983 = vmatmul.mubr.f32.gmra.mrb[4].mxu1 %v2926_v11 }
  0x31   : > { %2383 = vmatpush3.bf16.msra.mxu1 %v2380_v4  ;;  %2159 = vmatmul.mubr.f32.gmra.mrb[4].mxu0 %v2929_v13  ;;  %v2540_v4 = vpack.c.bf16 %v1667_v61, %v1666_v59  ;;  %v1593_v59 = vld [vmem:[%s3349_s1 + $0x198] sm:$0xff]  ;;  %v1688_v61 = vld [vmem:[%s3349_s1 + $0x390] sm:$0xff] }
  0x32   : > { %2511 = vmatpush3.bf16.msra.mxu0 %v2508_v6  ;;  %2385 = vmatprep.subr.bf16.mxu1 %v2384_v12  ;;  %v1572_v6 = vld [vmem:[%s3349_s1 + $0x130] sm:$0xff] }
  0x33   : > { %2513 = vmatprep.subr.bf16.mxu0 %v2512_v14  ;;  %1985 = vmatprep.mubr.f32.mxu1 %v2929_v13  ;;  %v2416_v15 = vpack.c.bf16 %v1573_v7, %v1572_v6  ;;  %v1594_v7 = vld [vmem:[%s3349_s1 + $0x1a0] sm:$0xff] }
  0x34   : > { %2161 = vmatprep.mubr.f32.mxu0 %v2948_v19  ;;  %1986 = vmatmul.mubr.f32.gmra.mrb[6].mxu1 %v2948_v19 }
  0x35   : > { %2387 = vmatpush3.bf16.msra.mxu1 %v2384_v12  ;;  %2162 = vmatmul.mubr.f32.gmra.mrb[6].mxu0 %v2951_v21  ;;  %v3074_v12 = vld [vmem:[%s2811_s25 + $0x52] sm:$0xff] }
  0x36   : > { %2515 = vmatpush3.bf16.msra.mxu0 %v2512_v14  ;;  %2389 = vmatprep.subr.bf16.mxu1 %v2388_v20  ;;  %v3077_v14 = vld [vmem:[%s2811_s25 + $0x50] sm:$0xff] }
  0x37   : > { %2517 = vmatprep.subr.bf16.mxu0 %v2516_v22  ;;  %2020 = vmatprep.mubr.f32.mxu1 %v183_v27 }
  0x38   : > { %2196 = vmatprep.mubr.f32.mxu0 %v2971_v28 }
  0x39   : > { %2391 = vmatpush3.bf16.msra.mxu1 %v2388_v20  ;;  %v1575_v20 = vld [vmem:[%s3349_s1 + $0x148] sm:$0xff] }
  0x3a   : > { %2519 = vmatpush3.bf16.msra.mxu0 %v2516_v22  ;;  %2393 = vmatprep.subr.bf16.mxu1 %v2392_v29  ;;  %v1670_v22 = vld [vmem:[%s3349_s1 + $0x340] sm:$0xff]  ;;  %v2420_v27 = vpack.c.bf16 %v1575_v20, %v1574_v18  ;;  %v1597_v20 = vld [vmem:[%s3349_s1 + $0x1b8] sm:$0xff] }
  0x3b   : > { %2521 = vmatprep.subr.bf16.mxu0 %v2520_v30 }
  0x3d   : > { %2395 = vmatpush3.bf16.msra.mxu1 %v2392_v29  ;;  %v3108_v29 = vld [vmem:[%s2811_s25 + $0x82] sm:$0xff] }
  0x3e   : > { %2523 = vmatpush3.bf16.msra.mxu0 %v2520_v30  ;;  %2397 = vmatprep.subr.bf16.mxu1 %v2396_v35  ;;  %v2548_v30 = vpack.c.bf16 %v1671_v23, %v1670_v22  ;;  %v1692_v22 = vld [vmem:[%s3349_s1 + $0x3b0] sm:$0xff]  ;;  %v1693_v23 = vld [vmem:[%s3349_s1 + $0x3b8] sm:$0xff] }
  0x3f   : > { %2525 = vmatprep.subr.bf16.mxu0 %v2524_v36 }
  0x41   : > { %2399 = vmatpush3.bf16.msra.mxu1 %v2396_v35  ;;  %v442_v35 = vld [vmem:[%s2811_s25 + $0x2] sm:$0xff] }
  0x42   : > { %2527 = vmatpush3.bf16.msra.mxu0 %v2524_v36  ;;  %2401 = vmatprep.subr.bf16.mxu1 %v2400_v41  ;;  %v2424_v36 = vpack.c.bf16 %v1577_v32, %v1576_v31  ;;  %v1598_v31 = vld [vmem:[%s3349_s1 + $0x1c0] sm:$0xff]  ;;  %v1599_v32 = vld [vmem:[%s3349_s1 + $0x1c8] sm:$0xff] }
  0x43   : > { %2529 = vmatprep.subr.bf16.mxu0 %v2528_v42 }
  0x45   : > { %2403 = vmatpush3.bf16.msra.mxu1 %v2400_v41  ;;  %v1675_v41 = vld [vmem:[%s3349_s1 + $0x368] sm:$0xff] }
  0x46   : > { %2531 = vmatpush3.bf16.msra.mxu0 %v2528_v42  ;;  %2405 = vmatprep.subr.bf16.mxu1 %v2404_v47  ;;  %v2428_v42 = vpack.c.bf16 %v1579_v39, %v1578_v38  ;;  %v2556_v43 = vpack.c.bf16 %v1675_v41, %v1674_v40  ;;  %v2580_v38 = vpack.c.bf16 %v1695_v34, %v1694_v33  ;;  %v1600_v39 = vld [vmem:[%s3349_s1 + $0x1d0] sm:$0xff]  ;;  %v1601_v40 = vld [vmem:[%s3349_s1 + $0x1d8] sm:$0xff] }
  0x47   : > { %2533 = vmatprep.subr.bf16.mxu0 %v2532_v48  ;;  %v1696_v41 = vld [vmem:[%s3349_s1 + $0x3d0] sm:$0xff] }
  0x48   : > { %2021 = vmatmul.mubr.f32.vlgmr.msra.gmra.mrb[0].mxu1 %v3023_v53 }
  0x49   : > { %2407 = vmatpush3.bf16.msra.mxu1 %v2404_v47  ;;  %2197 = vmatmul.mubr.f32.vlgmr.msra.gmra.mrb[0].mxu0 %v3026_v54  ;;  %v1677_v47 = vld [vmem:[%s3349_s1 + $0x378] sm:$0xff] }
  0x4a   : > { %2535 = vmatpush3.bf16.msra.mxu0 %v2532_v48  ;;  %2409 = vmatprep.subr.bf16.mxu1 %v2408_v55  ;;  %v2432_v48 = vpack.c.bf16 %v1581_v45, %v1580_v44  ;;  %v2560_v49 = vpack.c.bf16 %v1677_v47, %v1676_v46  ;;  %v1602_v45 = vld [vmem:[%s3349_s1 + $0x1e0] sm:$0xff]  ;;  %v1603_v46 = vld [vmem:[%s3349_s1 + $0x1e8] sm:$0xff] }
  0x4b   : > { %2537 = vmatprep.subr.bf16.mxu0 %v2536_v56  ;;  %2023 = vmatprep.mubr.f32.mxu1 %v3042_v62  ;;  %v1698_v47 = vld [vmem:[%s3349_s1 + $0x3e0] sm:$0xff] }
  0x4c   : > { %2199 = vmatprep.mubr.f32.mxu0 %v3046_v63  ;;  %2024 = vmatmul.mubr.f32.gmra.mrb[2].mxu1 %v3049_v0 }
  0x4d   : > { %2411 = vmatpush3.bf16.msra.mxu1 %v2408_v55  ;;  %2200 = vmatmul.mubr.f32.gmra.mrb[2].mxu0 %v3052_v2  ;;  %v1687_v55 = vld [vmem:[%s3349_s1 + $0x388] sm:$0xff] }
  0x4e   : > { %2539 = vmatpush3.bf16.msra.mxu0 %v2536_v56  ;;  %2413 = vmatprep.subr.bf16.mxu1 %v2412_v1  ;;  %v2436_v56 = vpack.c.bf16 %v1591_v51, %v1590_v50  ;;  %v2564_v57 = vpack.c.bf16 %v1687_v55, %v1686_v52  ;;  %v1605_v51 = vld [vmem:[%s3349_s1 + $0x1f8] sm:$0xff]  ;;  %v1700_v52 = vld [vmem:[%s3349_s1 + $0x3f0] sm:$0xff] }
  0x4f   : > { %2541 = vmatprep.subr.bf16.mxu0 %v2540_v4  ;;  %2026 = vmatprep.mubr.f32.mxu1 %v3070_v10 }
  0x50   : > { %2202 = vmatprep.mubr.f32.mxu0 %v3074_v12  ;;  %2027 = vmatmul.mubr.f32.gmra.mrb[4].mxu1 %v3077_v14 }
  0x51   : > { %2415 = vmatpush3.bf16.msra.mxu1 %v2412_v1  ;;  %2203 = vmatmul.mubr.f32.gmra.mrb[4].mxu0 %v3080_v16  ;;  %v1689_v1 = vld [vmem:[%s3349_s1 + $0x398] sm:$0xff] }
  0x52   : > { %2543 = vmatpush3.bf16.msra.mxu0 %v2540_v4  ;;  %2417 = vmatprep.subr.bf16.mxu1 %v2416_v15  ;;  %v2440_v4 = vpack.c.bf16 %v1593_v59, %v1592_v58  ;;  %v2568_v6 = vpack.c.bf16 %v1689_v1, %v1688_v61  ;;  %v1711_v58 = vld [vmem:[%s3349_s1 + $0x408] sm:$0xff]  ;;  %v1712_v61 = vld [vmem:[%s3349_s1 + $0x410] sm:$0xff]  ;;  %v1713_v1 = vld [vmem:[%s3349_s1 + $0x418] sm:$0xff] }
  0x53   : > { %2545 = vmatprep.subr.bf16.mxu0 %v2544_v17  ;;  %2029 = vmatprep.mubr.f32.mxu1 %v3098_v24 }
  0x54   : > { %2205 = vmatprep.mubr.f32.mxu0 %v3102_v25  ;;  %2030 = vmatmul.mubr.f32.gmra.mrb[6].mxu1 %v3105_v26 }
  0x55   : > { %2419 = vmatpush3.bf16.msra.mxu1 %v2416_v15  ;;  %2206 = vmatmul.mubr.f32.gmra.mrb[6].mxu0 %v3108_v29  ;;  %v1691_v15 = vld [vmem:[%s3349_s1 + $0x3a8] sm:$0xff] }
  0x56   : > { %2547 = vmatpush3.bf16.msra.mxu0 %v2544_v17  ;;  %2421 = vmatprep.subr.bf16.mxu1 %v2420_v27  ;;  %v2444_v17 = vpack.c.bf16 %v1595_v8, %v1594_v7  ;;  %v2572_v18 = vpack.c.bf16 %v1691_v15, %v1690_v9  ;;  %v1715_v7 = vld [vmem:[%s3349_s1 + $0x428] sm:$0xff]  ;;  %v1717_v9 = vld [vmem:[%s3349_s1 + $0x438] sm:$0xff]  ;;  %v1724_v15 = vld [vmem:[%s3349_s1 + $0x470] sm:$0xff] }
  0x57   : > { %2549 = vmatprep.subr.bf16.mxu0 %v2548_v30  ;;  %2064 = vmatprep.mubr.f32.mxu1 %v442_v35  ;;  %v3223_v35 = vld [vmem:[%s2811_s25 + $0x80] sm:$0xff] }
  0x58   : > { %2240 = vmatprep.mubr.f32.mxu0 %v3042_v62 }
  0x59   : > { %2423 = vmatpush3.bf16.msra.mxu1 %v2420_v27 }
  0x5a   : > { %2551 = vmatpush3.bf16.msra.mxu0 %v2548_v30  ;;  %2425 = vmatprep.subr.bf16.mxu1 %v2424_v36  ;;  %v2576_v30 = vpack.c.bf16 %v1693_v23, %v1692_v22 }
  0x5b   : > { %2553 = vmatprep.subr.bf16.mxu0 %v2552_v37 }
  0x5d   : > { %2427 = vmatpush3.bf16.msra.mxu1 %v2424_v36  ;;  %v2452_v36 = vpack.c.bf16 %v1599_v32, %v1598_v31 }
  0x5e   : > { %2555 = vmatpush3.bf16.msra.mxu0 %v2552_v37  ;;  %2429 = vmatprep.subr.bf16.mxu1 %v2428_v42  ;;  %v1661_v37 = vld [vmem:[%s2811_s25 + $0x90] sm:$0xff] }
  0x5f   : > { %2557 = vmatprep.subr.bf16.mxu0 %v2556_v43 }
  0x61   : > { %2431 = vmatpush3.bf16.msra.mxu1 %v2428_v42  ;;  %v1697_v42 = vld [vmem:[%s3349_s1 + $0x3d8] sm:$0xff] }
  0x62   : > { %2559 = vmatpush3.bf16.msra.mxu0 %v2556_v43  ;;  %2433 = vmatprep.subr.bf16.mxu1 %v2432_v48  ;;  %v2456_v43 = vpack.c.bf16 %v1601_v40, %v1600_v39  ;;  %v2584_v44 = vpack.c.bf16 %v1697_v42, %v1696_v41 }
  0x63   : > { %2561 = vmatprep.subr.bf16.mxu0 %v2560_v49 }
  0x65   : > { %2435 = vmatpush3.bf16.msra.mxu1 %v2432_v48  ;;  %v1699_v48 = vld [vmem:[%s3349_s1 + $0x3e8] sm:$0xff] }
  0x66   : > { %2563 = vmatpush3.bf16.msra.mxu0 %v2560_v49  ;;  %2437 = vmatprep.subr.bf16.mxu1 %v2436_v56  ;;  %v2460_v49 = vpack.c.bf16 %v1603_v46, %v1602_v45  ;;  %v2588_v50 = vpack.c.bf16 %v1699_v48, %v1698_v47 }
  0x67   : > { %2565 = vmatprep.subr.bf16.mxu0 %v2564_v57 }
  0x68   : > { %2065 = vmatmul.mubr.f32.vlgmr.msra.gmra.mrb[0].mxu1 %v2971_v28  ;;  %v1596_v28 = vld [vmem:[%s3349_s1 + $0x1b0] sm:$0xff] }
  0x69   : > { %2439 = vmatpush3.bf16.msra.mxu1 %v2436_v56  ;;  %2241 = vmatmul.mubr.f32.vlgmr.msra.gmra.mrb[0].mxu0 %v3049_v0  ;;  %v2448_v27 = vpack.c.bf16 %v1597_v20, %v1596_v28 }
  0x6a   : > { %2567 = vmatpush3.bf16.msra.mxu0 %v2564_v57  ;;  %2441 = vmatprep.subr.bf16.mxu1 %v2440_v4  ;;  %v1710_v57 = vld [vmem:[%s3349_s1 + $0x400] sm:$0xff] }
  0x6b   : > { %2569 = vmatprep.subr.bf16.mxu0 %v2568_v6  ;;  %2067 = vmatprep.mubr.f32.mxu1 %v3026_v54  ;;  %v2596_v59 = vpack.c.bf16 %v1711_v58, %v1710_v57 }
  0x6c   : > { %2243 = vmatprep.mubr.f32.mxu0 %v3070_v10  ;;  %2068 = vmatmul.mubr.f32.gmra.mrb[2].mxu1 %v3046_v63 }
  0x6d   : > { %2443 = vmatpush3.bf16.msra.mxu1 %v2440_v4  ;;  %2244 = vmatmul.mubr.f32.gmra.mrb[2].mxu0 %v3077_v14  ;;  %v2600_v4 = vpack.c.bf16 %v1713_v1, %v1712_v61 }
  0x6e   : > { %2571 = vmatpush3.bf16.msra.mxu0 %v2568_v6  ;;  %2445 = vmatprep.subr.bf16.mxu1 %v2444_v17  ;;  %v1714_v6 = vld [vmem:[%s3349_s1 + $0x420] sm:$0xff] }
  0x6f   : > { %2573 = vmatprep.subr.bf16.mxu0 %v2572_v18  ;;  %2070 = vmatprep.mubr.f32.mxu1 %v3052_v2  ;;  %v2604_v8 = vpack.c.bf16 %v1715_v7, %v1714_v6 }
  0x70   : > { %2246 = vmatprep.mubr.f32.mxu0 %v3098_v24  ;;  %2071 = vmatmul.mubr.f32.gmra.mrb[4].mxu1 %v3074_v12 }
  0x71   : > { %2447 = vmatpush3.bf16.msra.mxu1 %v2444_v17  ;;  %2247 = vmatmul.mubr.f32.gmra.mrb[4].mxu0 %v3105_v26  ;;  %v1725_v17 = vld [vmem:[%s3349_s1 + $0x478] sm:$0xff] }
  0x72   : > { %2575 = vmatpush3.bf16.msra.mxu0 %v2572_v18  ;;  %2449 = vmatprep.subr.bf16.mxu1 %v2448_v27 }
  0x73   : > { %2577 = vmatprep.subr.bf16.mxu0 %v2576_v30  ;;  %2073 = vmatprep.mubr.f32.mxu1 %v3080_v16 }
  0x74   : > { %2249 = vmatprep.mubr.f32.mxu0 %v3223_v35  ;;  %2074 = vmatmul.mubr.f32.gmra.mrb[6].mxu1 %v3102_v25 }
  0x75   : > { %2451 = vmatpush3.bf16.msra.mxu1 %v2448_v27  ;;  %2250 = vmatmul.mubr.f32.gmra.mrb[6].mxu0 %v1661_v37 }
  0x76   : > { %2579 = vmatpush3.bf16.msra.mxu0 %v2576_v30  ;;  %2453 = vmatprep.subr.bf16.mxu1 %v2452_v36 }
  0x77   : > { %2581 = vmatprep.subr.bf16.mxu0 %v2580_v38  ;;  %2108 = vmatprep.mubr.f32.mxu1 %v3023_v53  ;;  %v1604_v53 = vld [vmem:[%s3349_s1 + $0x1f0] sm:$0xff] }
  0x78   : > { %2284 = vmatprep.mubr.f32.mxu0 %v2888_v60  ;;  %v1701_v60 = vld [vmem:[%s3349_s1 + $0x3f8] sm:$0xff]  ;;  %v2464_v55 = vpack.c.bf16 %v1605_v51, %v1604_v53 }
  0x79   : > { %2455 = vmatpush3.bf16.msra.mxu1 %v2452_v36  ;;  %v2592_v56 = vpack.c.bf16 %v1701_v60, %v1700_v52 }
  0x7a   : > { %2583 = vmatpush3.bf16.msra.mxu0 %v2580_v38  ;;  %2457 = vmatprep.subr.bf16.mxu1 %v2456_v43 }
  0x7b   : > { %2585 = vmatprep.subr.bf16.mxu0 %v2584_v44 }
  0x7d   : > { %2459 = vmatpush3.bf16.msra.mxu1 %v2456_v43 }
  0x7e   : > { %2587 = vmatpush3.bf16.msra.mxu0 %v2584_v44  ;;  %2461 = vmatprep.subr.bf16.mxu1 %v2460_v49 }
  0x7f   : > { %2589 = vmatprep.subr.bf16.mxu0 %v2588_v50 }
  0x81   : > { %2463 = vmatpush3.bf16.msra.mxu1 %v2460_v49 }
  0x82   : > { %2591 = vmatpush3.bf16.msra.mxu0 %v2588_v50  ;;  %2465 = vmatprep.subr.bf16.mxu1 %v2464_v55 }
  0x83   : > { %2593 = vmatprep.subr.bf16.mxu0 %v2592_v56 }
  0x85   : > { %2467 = vmatpush3.bf16.msra.mxu1 %v2464_v55 }
  0x86   : > { %2595 = vmatpush3.bf16.msra.mxu0 %v2592_v56  ;;  %2628 = vmatprep.subr.bf16.mxu1 %v2596_v59 }
  0x87   : > { %2597 = vmatprep.subr.bf16.mxu0 %v2596_v59 }
  0x88   : > { %2109 = vmatmul.mubr.f32.vlgmr.msra.gmra.mrb[0].mxu1 %v3042_v62  ;;  %v1716_v62 = vld [vmem:[%s3349_s1 + $0x430] sm:$0xff] }
  0x89   : > { %2285 = vmatmul.mubr.f32.vlgmr.msra.gmra.mrb[0].mxu0 %v2904_v3  ;;  %2636 = vmatpush3.bf16.msra.mxu1 %v2596_v59  ;;  %v2608_v3 = vpack.c.bf16 %v1717_v9, %v1716_v62 }
  0x8a   : > { %2599 = vmatpush3.bf16.msra.mxu0 %v2596_v59  ;;  %2111 = vmatprep.mubr.f32.mxu1 %v3049_v0  ;;  %v1719_v0 = vld [vmem:[%s3349_s1 + $0x448] sm:$0xff] }
  0x8b   : > { %2287 = vmatprep.mubr.f32.mxu0 %v2907_v5  ;;  %2601 = vmatprep.subr.bf16.mxu0 %v2600_v4  ;;  %v1718_v5 = vld [vmem:[%s3349_s1 + $0x440] sm:$0xff] }
  0x8c   : > { %2112 = vmatmul.mubr.f32.gmra.mrb[2].mxu1 %v3070_v10  ;;  %2629 = vmatprep.subr.bf16.mxu1 %v2600_v4  ;;  %v1720_v10 = vld [vmem:[%s3349_s1 + $0x450] sm:$0xff] }
  0x8d   : > { %2288 = vmatmul.mubr.f32.gmra.mrb[2].mxu0 %v2926_v11  ;;  %2637 = vmatpush3.bf16.msra.mxu1 %v2600_v4  ;;  %v1685_v11 = vld [vmem:[%s2811_s25 + $0x91] sm:$0xff] }
  0x8e   : > { %2603 = vmatpush3.bf16.msra.mxu0 %v2600_v4  ;;  %2114 = vmatprep.mubr.f32.mxu1 %v3077_v14  ;;  %v1721_v14 = vld [vmem:[%s3349_s1 + $0x458] sm:$0xff] }
  0x8f   : > { %2290 = vmatprep.mubr.f32.mxu0 %v2929_v13  ;;  %2605 = vmatprep.subr.bf16.mxu0 %v2604_v8  ;;  %v2612_v13 = vpack.c.bf16 %v1719_v0, %v1718_v5 }
  0x90   : > { %2115 = vmatmul.mubr.f32.gmra.mrb[4].mxu1 %v3098_v24  ;;  %2630 = vmatprep.subr.bf16.mxu1 %v2604_v8  ;;  %v1723_v24 = vld [vmem:[%s3349_s1 + $0x468] sm:$0xff] }
  0x91   : > { %2291 = vmatmul.mubr.f32.gmra.mrb[4].mxu0 %v2948_v19  ;;  %2638 = vmatpush3.bf16.msra.mxu1 %v2604_v8  ;;  %v2616_v19 = vpack.c.bf16 %v1721_v14, %v1720_v10 }
  0x92   : > { %2607 = vmatpush3.bf16.msra.mxu0 %v2604_v8  ;;  %2117 = vmatprep.mubr.f32.mxu1 %v3105_v26 }
  0x93   : > { %2293 = vmatprep.mubr.f32.mxu0 %v2951_v21  ;;  %2609 = vmatprep.subr.bf16.mxu0 %v2608_v3  ;;  %v1722_v21 = vld [vmem:[%s3349_s1 + $0x460] sm:$0xff] }
  0x94   : > { %2118 = vmatmul.mubr.f32.gmra.mrb[6].mxu1 %v3223_v35  ;;  %2631 = vmatprep.subr.bf16.mxu1 %v2608_v3  ;;  %v2620_v26 = vpack.c.bf16 %v1723_v24, %v1722_v21 }
  0x95   : > { %2294 = vmatmul.mubr.f32.gmra.mrb[6].mxu0 %v1685_v11  ;;  %2639 = vmatpush3.bf16.msra.mxu1 %v2608_v3 }
  0x96   : > { %2611 = vmatpush3.bf16.msra.mxu0 %v2608_v3  ;;  %2632 = vmatprep.subr.bf16.mxu1 %v2612_v13 }
  0x97   : > { %2613 = vmatprep.subr.bf16.mxu0 %v2612_v13  ;;  %2328 = vmatprep.mubr.f32.mxu0 %v3026_v54  ;;  %v2624_v54 = vpack.c.bf16 %v1725_v17, %v1724_v15 }
  0x98   : > { %2334 = vmatprep.mubr.f32.mxu1 %v3080_v16  ;;  %v1709_v16 = vld [vmem:[%s2811_s25 + $0x92] sm:$0xff]  ;;  %s1547_s25 = sshll.u32 %s2751_s13, 3  ;;  %s1549_s13 = sshll.u32 %s2784_s5, 3 }
  0x99   : > { %2640 = vmatpush3.bf16.msra.mxu1 %v2612_v13  ;;  %p174_p4 = scmp.lt.s32.totalorder %s1547_s25, 15  ;;  %s182_s9 = scalar_lea.vmem %s3351_s3, %s1549_s13 }
  0x9a   : > { %2615 = vmatpush3.bf16.msra.mxu0 %v2612_v13  ;;  %2633 = vmatprep.subr.bf16.mxu1 %v2616_v19 }
  0x9b   : > { %2617 = vmatprep.subr.bf16.mxu0 %v2616_v19  ;;  %s3353_s25 = smov (!%p174_p4, %s1547_s25), 15 }
  0x9c   : > { %s1548_s29 = sshll.u32 %s3353_s25, 3 }
  0x9d   : > { %2641 = vmatpush3.bf16.msra.mxu1 %v2616_v19  ;;  %s177_s6 = scalar_lea.vmem %s3350_s2, %s1548_s29 }
  0x9e   : > { %2619 = vmatpush3.bf16.msra.mxu0 %v2616_v19  ;;  %2634 = vmatprep.subr.bf16.mxu1 %v2620_v26 }
  0x9f   : > { %2621 = vmatprep.subr.bf16.mxu0 %v2620_v26 }
  0xa1   : > { %2642 = vmatpush3.bf16.msra.mxu1 %v2620_v26 }
  0xa2   : > { %2623 = vmatpush3.bf16.msra.mxu0 %v2620_v26  ;;  %2635 = vmatprep.subr.bf16.mxu1 %v2624_v54 }
  0xa3   : > { %2625 = vmatprep.subr.bf16.mxu0 %v2624_v54 }
  0xa5   : > { %2643 = vmatpush3.bf16.msra.mxu1 %v2624_v54 }
  0xa6   : > { %2627 = vmatpush3.bf16.msra.mxu0 %v2624_v54 }
  0xa8   : > { %2335 = vmatmul.mubr.f32.vlgmr.msra.gmra.mrb[8].mxu1 %v3102_v25 }
  0xa9   : > { %2329 = vmatmul.mubr.f32.vlgmr.msra.gmra.mrb[0].mxu0 %v3046_v63  ;;  %2337 = vmatprep.mubr.f32.mxu1 %v3108_v29 }
  0xaa   : > { %2331 = vmatprep.mubr.f32.mxu0 %v3052_v2 }
  0xac   : > { %2338 = vmatmul.mubr.f32.gmra.mrb[10].mxu1 %v1709_v16 }
  0xad   : > { %2332 = vmatmul.mubr.f32.gmra.mrb[2].mxu0 %v3074_v12 }
 0x15b   : > { %v2110_v18 = vpop.f32.mrb[0].mxu1 }
 0x15c   : > { %v672_v28 = vpop.f32.mrb[1].mxu1 }
 0x15f   : > { %v2113_v20 = vpop.f32.mrb[2].mxu1 }
 0x160   : > { %v682_v22 = vpop.f32.mrb[3].mxu1 }
 0x163   : > { %v2116_v23 = vpop.f32.mrb[4].mxu1 }
 0x164   : > { %v2292_v27 = vpop.f32.mrb[4].mxu0  ;;  %v692_v30 = vpop.f32.mrb[5].mxu1 }
 0x165   : > { %v2648_v31 = vadd.f32 %v2292_v27, %v2116_v23  ;;  %v1245_v25 = vpop.f32.mrb[5].mxu0 }
 0x166   : > { %v2650_v32 = vadd.f32 %v1245_v25, %v692_v30 }
 0x167   : > { %v2119_v63 = vpop.f32.mrb[6].mxu1 }
 0x168   : > { %v2295_v33 = vpop.f32.mrb[6].mxu0  ;;  %v702_v29 = vpop.f32.mrb[7].mxu1 }
 0x169   : > { %v2652_v34 = vadd.f32 %v2295_v33, %v2119_v63  ;;  %v1255_v35 = vpop.f32.mrb[7].mxu0 }
 0x16a   : > { %v2654_v2 = vadd.f32 %v1255_v35, %v702_v29 }
 0x17b   : > { %v2336_v12 = vpop.f32.mrb[8].mxu1 }
 0x17c   : > { %v2330_v36 = vpop.f32.mrb[0].mxu0  ;;  %v2649_v37 = vadd.f32 %v2648_v31, %v2336_v12  ;;  %v1383_v38 = vpop.f32.mrb[9].mxu1 }
 0x17d   : > { %v2644_v39 = vadd.f32 %v2330_v36, %v2110_v18  ;;  %v1363_v40 = vpop.f32.mrb[1].mxu0  ;;  %v2651_v41 = vadd.f32 %v2650_v32, %v1383_v38 }
 0x17e   : > { %1415 = vst [vmem:[%s177_s6 + $0x28] sm:$0xff] %v2649_v37  ;;  %v2645_v42 = vadd.f32 %v1363_v40, %v672_v28  ;;  %v1437_v6 = vmul.f32 %v2649_v37, %v2649_v37 }
 0x17f   : > { %1411 = vst [vmem:[%s177_s6 + $0x8] sm:$0xff] %v2644_v39  ;;  %v1433_v43 = vmul.f32 %v2644_v39, %v2644_v39  ;;  %1414 = vst [vmem:[%s177_s6 + $0x20] sm:$0xff] %v2651_v41  ;;  %v2339_v44 = vpop.f32.mrb[10].mxu1  ;;  %v1436_v61 = vmul.f32 %v2651_v41, %v2651_v41 }
 0x180   : > { %1410 = vst [vmem:[%s177_s6] sm:$0xff] %v2645_v42  ;;  %v1418_v45 = vadd.f32 %v2645_v42, %v2644_v39  ;;  %v1432_v46 = vmul.f32 %v2645_v42, %v2645_v42  ;;  %v2333_v47 = vpop.f32.mrb[2].mxu0  ;;  %v2653_v48 = vadd.f32 %v2652_v34, %v2339_v44  ;;  %v1393_v49 = vpop.f32.mrb[11].mxu1 }
 0x181   : > { %v2646_v50 = vadd.f32 %v2333_v47, %v2113_v20  ;;  %v1373_v53 = vpop.f32.mrb[3].mxu0  ;;  %v2655_v51 = vadd.f32 %v2654_v2, %v1393_v49 }
 0x182   : > { %v1440_v52 = vadd.f32 %v1433_v43, %v1432_v46  ;;  %1417 = vst [vmem:[%s177_s6 + $0x38] sm:$0xff] %v2653_v48  ;;  %v2647_v60 = vadd.f32 %v1373_v53, %v682_v22  ;;  %v1439_v5 = vmul.f32 %v2653_v48, %v2653_v48 }
 0x183   : > { %1413 = vst [vmem:[%s177_s6 + $0x18] sm:$0xff] %v2646_v50  ;;  %1416 = vst [vmem:[%s177_s6 + $0x30] sm:$0xff] %v2655_v51  ;;  %v1435_v57 = vmul.f32 %v2646_v50, %v2646_v50  ;;  %v1438_v9 = vmul.f32 %v2655_v51, %v2655_v51 }
 0x184   : > { %1412 = vst [vmem:[%s177_s6 + $0x10] sm:$0xff] %v2647_v60  ;;  %v1419_v55 = vadd.f32 %v2647_v60, %v1418_v45  ;;  %v1434_v56 = vmul.f32 %v2647_v60, %v2647_v60 }
 0x186   : > { %v1420_v58 = vadd.f32 %v2646_v50, %v1419_v55  ;;  %v1441_v59 = vadd.f32 %v1440_v52, %v1434_v56 }
 0x188   : > { %v1442_v1 = vadd.f32 %v1441_v59, %v1435_v57  ;;  %v1421_v4 = vadd.f32 %v2651_v41, %v1420_v58 }
 0x18a   : > { %v1422_v7 = vadd.f32 %v2649_v37, %v1421_v4  ;;  %v1443_v8 = vadd.f32 %v1442_v1, %v1436_v61 }
 0x18c   : > { %v1423_v62 = vadd.f32 %v2655_v51, %v1422_v7  ;;  %v1444_v3 = vadd.f32 %v1443_v8, %v1437_v6 }
 0x18e   : > { %v1424_v0 = vadd.f32 %v2653_v48, %v1423_v62  ;;  %v1445_v11 = vadd.f32 %v1444_v3, %v1438_v9 }
 0x190   : > { %v1425_v13 = vrot.slane %v1424_v0, 4  ;;  %v1446_v10 = vadd.f32 %v1445_v11, %v1439_v5 }
 0x192   : > { %v1426_v14 = vadd.f32 %v1425_v13, %v1424_v0  ;;  %v1447_v19 = vrot.slane %v1446_v10, 4 }
 0x194   : > { %v1427_v21 = vrot.slane %v1426_v14, 2  ;;  %v1448_v24 = vadd.f32 %v1447_v19, %v1446_v10 }
 0x196   : > { %v1428_v26 = vadd.f32 %v1427_v21, %v1426_v14  ;;  %v1449_v15 = vrot.slane %v1448_v24, 2 }
 0x198   : > { %v1429_v17 = vrot.slane %v1428_v26, 1  ;;  %v1450_v54 = vadd.f32 %v1449_v15, %v1448_v24 }
 0x19a   : > { %v1430_v16 = vadd.f32 %v1429_v17, %v1428_v26  ;;  %v1451_v18 = vrot.slane %v1450_v54, 1 }
 0x19c   : > { %1431 = vst [vmem:[%s182_s9] sm:$0x1] %v1430_v16  ;;  %v1452_v28 = vadd.f32 %v1451_v18, %v1450_v54 }
 0x19e   : > { %1453 = vst [vmem:[%s182_s9 + $0x1] sm:$0x1] %v1452_v28 }
 0x19f PF: > { %s14_s12 = sadd.s32 1, %s2723_s12  }
 0x1a0   : > { %p11_p5 = scmp.ge.s32.totalorder %s14_s12, 4  }
 0x1a2   :  { %13 = sbr.rel (!%p11_p5) target bundleno = 1 (0x1), region = 80 }

</bundles_post_ra>
